<compile_context>
chip_gen: v5e
topology: v5e:2x2
jax: 0.10.0
libtpu: 0.0.40
codegen_flags: <defaults>
</compile_context>

<pallas_src>
import math
import numpy as np
import jax
import jax.numpy as jnp
from jax.experimental import pallas as pl
from jax.experimental.pallas import tpu as pltpu

# Scaled-down hyper-parameters (d_model=512, d_k=d_v=64, h=8, d_ff=2048 in the real model)
D_MODEL = 32
D_K = 8
D_V = 8
H = 4
D_FF = 64
LN_EPS = 1e-5
SCALE = 1.0 / math.sqrt(D_K)


def _layer_norm(x, g, b, eps=LN_EPS):
    mu = jnp.mean(x, axis=-1, keepdims=True)
    var = jnp.mean((x - mu) ** 2, axis=-1, keepdims=True)
    return (x - mu) * jax.lax.rsqrt(var + eps) * g + b


def _kernel(q_ref, k_ref, v_ref, p_ref, gx_ref,
            wqkv_ref, bqkv_ref, wo_ref, w1_ref, b1_ref, w2_ref, vecs_ref,
            out_ref):
    # One grid step == one batch element (leading batch dim squeezed out of every block).
    x_q = q_ref[...]                   # (N, D) raw queries (outer residual)
    x_k = k_ref[...]
    x_v = v_ref[...]
    pos = p_ref[...]
    qp = x_q + pos                     # queries + pos (attention input & inner residual)
    kp = x_k + pos
    n = x_q.shape[0]

    # packed bias / LayerNorm vectors: rows = [bo, b2, ln1g, ln1b, lnog, lnob, ln2g, ln2b]
    vecs = vecs_ref[...]
    bo, b2 = vecs[0:1], vecs[1:2]
    ln1g, ln1b = vecs[2:3], vecs[3:4]
    lnog, lnob = vecs[4:5], vecs[5:6]
    ln2g, ln2b = vecs[6:7], vecs[7:8]

    # ---- Q/K/V projections: s=3 batched lane-dense GEMMs, output width H*d_k ----
    xs = jnp.stack([qp, kp, x_v], axis=0)                                # (3, N, D)
    qkv = jnp.einsum('snd,sdk->snk', xs, wqkv_ref[...],
                     preferred_element_type=jnp.float32) + bqkv_ref[...]  # (3, N, H*dk)
    q_h = qkv[0].reshape(n, H, D_K)                                      # (N, H, dk)
    k_h = qkv[1].reshape(n, H, D_K)
    v_h = qkv[2].reshape(n, H, D_V)

    # ---- per-head scores + geometry/extra-attention bias + softmax ----
    s = jnp.einsum('nhd,mhd->hnm', q_h, k_h,
                   preferred_element_type=jnp.float32) * SCALE           # (H, N, N)
    gx = gx_ref[...]                                                     # (2H, N, N): [geo; extr]
    # TODO(synk): hoist log(clip(geo)) out of the kernel when geo is shared across layers.
    logits = jnp.log(jnp.maximum(gx[:H], 1e-6)) + s + gx[H:]
    logits = logits - jnp.max(logits, axis=-1, keepdims=True)
    e = jnp.exp(logits)
    p = e * pl.reciprocal(jnp.sum(e, axis=-1, keepdims=True), approx=False)

    # ---- attention output: head concat to lanes, then single full-depth output GEMM ----
    o = jnp.einsum('hnm,mhe->nhe', p, v_h,
                   preferred_element_type=jnp.float32)                   # (N, H, dv)
    o = o.reshape(n, H * D_V)                                            # (N, H*dv)
    att = jnp.dot(o, wo_ref[...], preferred_element_type=jnp.float32) + bo   # (N, D)

    # ---- LayerNorm(qp + att), LayerNorm(queries + .), position-wise FFN ----
    x1 = _layer_norm(qp + att, ln1g, ln1b)
    x2 = _layer_norm(x_q + x1, lnog, lnob)
    hid = jnp.maximum(
        jnp.dot(x2, w1_ref[...], preferred_element_type=jnp.float32) + b1_ref[...], 0.0)
    ffo = jnp.dot(hid, w2_ref[...], preferred_element_type=jnp.float32) + b2
    out_ref[...] = _layer_norm(x2 + ffo, ln2g, ln2b)


def self_att_with_box_extr_att(queries, keys, values, geo, extr, pos, params):
    (wq, bq, wk, bk, wv, bv, wo, bo, ln1g, ln1b, lnog, lnob,
     w1, b1, w2, b2, ln2g, ln2b) = params
    B, N, D = queries.shape
    assert D == D_MODEL

    # ---- layout plumbing only (stacking parameters, no module compute) ----
    wqkv = jnp.stack([wq, wk, wv], axis=0)                                # (3, D, H*dk)
    bqkv = jnp.stack([bq, bk, bv], axis=0)                                # (3, 1, H*dk)
    vecs = jnp.concatenate([bo, b2, ln1g, ln1b, lnog, lnob, ln2g, ln2b], axis=0)  # (8, D)
    gx = jnp.concatenate([geo, extr], axis=1)                             # (B, 2H, N, N)

    in_specs = [
        pl.BlockSpec((None, N, D), lambda b: (b, 0, 0)),                  # queries
        pl.BlockSpec((None, N, D), lambda b: (b, 0, 0)),                  # keys
        pl.BlockSpec((None, N, D), lambda b: (b, 0, 0)),                  # values
        pl.BlockSpec((None, N, D), lambda b: (b, 0, 0)),                  # pos
        pl.BlockSpec((None, 2 * H, N, N), lambda b: (b, 0, 0, 0)),        # geo+extr, streamed
        pl.BlockSpec((3, D, H * D_K), lambda b: (0, 0, 0)),               # Wq/Wk/Wv (resident)
        pl.BlockSpec((3, 1, H * D_K), lambda b: (0, 0, 0)),               # bq/bk/bv
        pl.BlockSpec((H * D_V, D), lambda b: (0, 0)),                     # Wo
        pl.BlockSpec((D, D_FF), lambda b: (0, 0)),                        # W1
        pl.BlockSpec((1, D_FF), lambda b: (0, 0)),                        # b1
        pl.BlockSpec((D_FF, D), lambda b: (0, 0)),                        # W2
        pl.BlockSpec((8, D), lambda b: (0, 0)),                           # packed bias/LN vecs
    ]
    out_specs = pl.BlockSpec((None, N, D), lambda b: (b, 0, 0))

    inputs = (queries, keys, values, pos, gx, wqkv, bqkv, wo, w1, b1, w2, vecs)

    flops = B * (2 * 3 * N * D * (H * D_K)        # QKV projections
                 + 2 * H * N * N * D_K            # scores
                 + 2 * H * N * N * D_V            # p @ v
                 + 2 * N * (H * D_V) * D          # output projection
                 + 2 * N * D * D_FF               # FFN up
                 + 2 * N * D_FF * D)              # FFN down
    transcendentals = B * (2 * H * N * N + 3 * N)  # log + exp per logit, rsqrt per LN row
    bytes_accessed = sum(int(a.size) * 4 for a in inputs) + B * N * D * 4

    out = pl.pallas_call(
        _kernel,
        out_shape=jax.ShapeDtypeStruct((B, N, D), jnp.float32),
        grid_spec=pltpu.PrefetchScalarGridSpec(
            num_scalar_prefetch=0,
            grid=(B,),
            in_specs=in_specs,
            out_specs=out_specs,
        ),
        compiler_params=pltpu.CompilerParams(
            # batch axis is independent work -> megacore-shardable on v7x, pipelined elsewhere
            dimension_semantics=("parallel",),
            # raise above the 16/32 MiB scoped defaults; re-derive at production dims
            vmem_limit_bytes=32 * 1024 * 1024,
        ),
        cost_estimate=pl.CostEstimate(flops=flops,
                                      transcendentals=transcendentals,
                                      bytes_accessed=bytes_accessed),
    )(*inputs)
    return out


def _reference(queries, keys, values, geo, extr, pos, params):
    (wq, bq, wk, bk, wv, bv, wo, bo, ln1g, ln1b, lnog, lnob,
     w1, b1, w2, b2, ln2g, ln2b) = params
    B, N, D = queries.shape
    qp = queries + pos
    kp = keys + pos
    q = (qp @ wq + bq).reshape(B, N, H, D_K).transpose(0, 2, 1, 3)
    k = (kp @ wk + bk).reshape(B, N, H, D_K).transpose(0, 2, 1, 3)
    v = (values @ wv + bv).reshape(B, N, H, D_V).transpose(0, 2, 1, 3)
    s = jnp.einsum('bhqd,bhkd->bhqk', q, k) / math.sqrt(D_K)
    logits = jnp.log(jnp.clip(geo, 1e-6, None)) + s + extr
    p = jax.nn.softmax(logits, axis=-1)
    o = jnp.einsum('bhqk,bhkd->bhqd', p, v).transpose(0, 2, 1, 3).reshape(B, N, H * D_V)
    o = o @ wo + bo

    def ln(x, g, b):
        mu = x.mean(-1, keepdims=True)
        var = ((x - mu) ** 2).mean(-1, keepdims=True)
        return (x - mu) / jnp.sqrt(var + LN_EPS) * g + b

    x1 = ln(qp + o, ln1g, ln1b)
    x2 = ln(queries + x1, lnog, lnob)
    ffo = jnp.maximum(x2 @ w1 + b1, 0.0) @ w2 + b2
    return ln(x2 + ffo, ln2g, ln2b)


def _init_params(key):
    ks = jax.random.split(key, 8)
    s = 0.05
    wq = s * jax.random.normal(ks[0], (D_MODEL, H * D_K), jnp.float32)
    wk = s * jax.random.normal(ks[1], (D_MODEL, H * D_K), jnp.float32)
    wv = s * jax.random.normal(ks[2], (D_MODEL, H * D_V), jnp.float32)
    wo = s * jax.random.normal(ks[3], (H * D_V, D_MODEL), jnp.float32)
    bq = s * jax.random.normal(ks[4], (1, H * D_K), jnp.float32)
    bk = s * jax.random.normal(ks[5], (1, H * D_K), jnp.float32)
    bv = jnp.zeros((1, H * D_V), jnp.float32)
    bo = jnp.zeros((1, D_MODEL), jnp.float32)
    ln1g = jnp.ones((1, D_MODEL), jnp.float32)
    ln1b = jnp.zeros((1, D_MODEL), jnp.float32)
    lnog = jnp.ones((1, D_MODEL), jnp.float32)
    lnob = jnp.zeros((1, D_MODEL), jnp.float32)
    w1 = s * jax.random.normal(ks[6], (D_MODEL, D_FF), jnp.float32)
    b1 = jnp.zeros((1, D_FF), jnp.float32)
    w2 = s * jax.random.normal(ks[7], (D_FF, D_MODEL), jnp.float32)
    b2 = jnp.zeros((1, D_MODEL), jnp.float32)
    ln2g = jnp.ones((1, D_MODEL), jnp.float32)
    ln2b = jnp.zeros((1, D_MODEL), jnp.float32)
    return (wq, bq, wk, bk, wv, bv, wo, bo, ln1g, ln1b, lnog, lnob,
            w1, b1, w2, b2, ln2g, ln2b)


if __name__ == "__main__":
    B, N = 2, 8
    key = jax.random.PRNGKey(0)
    k_in, k_par = jax.random.split(key)
    kq, kk, kv, kp, kg, ke = jax.random.split(k_in, 6)

    queries = jax.random.normal(kq, (B, N, D_MODEL), jnp.float32)
    keys_ = jax.random.normal(kk, (B, N, D_MODEL), jnp.float32)
    values = jax.random.normal(kv, (B, N, D_MODEL), jnp.float32)
    pos = jax.random.normal(kp, (B, N, D_MODEL), jnp.float32)
    # relative geometry weights are non-negative (post-ReLU in DLCT)
    geo = jax.random.uniform(kg, (B, H, N, N), jnp.float32, minval=0.0, maxval=2.0)
    extr = 0.5 * jax.random.normal(ke, (B, H, N, N), jnp.float32)

    params = _init_params(k_par)

    out = self_att_with_box_extr_att(queries, keys_, values, geo, extr, pos, params)
    out = jax.block_until_ready(out)

    ref = _reference(queries, keys_, values, geo, extr, pos, params)
    np.testing.assert_allclose(np.asarray(out), np.asarray(ref), rtol=1e-4, atol=1e-4)

    print("KERNEL_OK")
</pallas_src>

<mosaic_0001>
module attributes {stable_mosaic.version = 11 : i64} {
  func.func @_kernel(%arg0: i32, %arg1: memref<1x8x32xf32, #tpu.memory_space<vmem>>, %arg2: memref<1x8x32xf32, #tpu.memory_space<vmem>>, %arg3: memref<1x8x32xf32, #tpu.memory_space<vmem>>, %arg4: memref<1x8x32xf32, #tpu.memory_space<vmem>>, %arg5: memref<1x8x8x8xf32, #tpu.memory_space<vmem>>, %arg6: memref<3x32x32xf32, #tpu.memory_space<vmem>>, %arg7: memref<3x1x32xf32, #tpu.memory_space<vmem>>, %arg8: memref<32x32xf32, #tpu.memory_space<vmem>>, %arg9: memref<32x64xf32, #tpu.memory_space<vmem>>, %arg10: memref<1x64xf32, #tpu.memory_space<vmem>>, %arg11: memref<64x32xf32, #tpu.memory_space<vmem>>, %arg12: memref<8x32xf32, #tpu.memory_space<vmem>>, %arg13: memref<1x8x32xf32, #tpu.memory_space<vmem>>) attributes {dimension_semantics = [#tpu.dimension_semantics<parallel>], iteration_bounds = array<i64: 2>, scalar_prefetch = 0 : i64, scratch_operands = 0 : i64, tpu.core_type = #tpu.core_type<tc>, window_params = [{transform_indices = @transform_0, window_bounds = array<i64: 1, 8, 32>}, {transform_indices = @transform_1, window_bounds = array<i64: 1, 8, 32>}, {transform_indices = @transform_2, window_bounds = array<i64: 1, 8, 32>}, {transform_indices = @transform_3, window_bounds = array<i64: 1, 8, 32>}, {transform_indices = @transform_4, window_bounds = array<i64: 1, 8, 8, 8>}, {pipeline_mode = #tpu.pipeline_mode<synchronous>, transform_indices = @transform_5, window_bounds = array<i64: 3, 32, 32>}, {pipeline_mode = #tpu.pipeline_mode<synchronous>, transform_indices = @transform_6, window_bounds = array<i64: 3, 1, 32>}, {pipeline_mode = #tpu.pipeline_mode<synchronous>, transform_indices = @transform_7, window_bounds = array<i64: 32, 32>}, {pipeline_mode = #tpu.pipeline_mode<synchronous>, transform_indices = @transform_8, window_bounds = array<i64: 32, 64>}, {pipeline_mode = #tpu.pipeline_mode<synchronous>, transform_indices = @transform_9, window_bounds = array<i64: 1, 64>}, {pipeline_mode = #tpu.pipeline_mode<synchronous>, transform_indices = @transform_10, window_bounds = array<i64: 64, 32>}, {pipeline_mode = #tpu.pipeline_mode<synchronous>, transform_indices = @transform_11, window_bounds = array<i64: 8, 32>}, {transform_indices = @transform_12, window_bounds = array<i64: 1, 8, 32>}]} {
    %c0 = arith.constant 0 : index
    %c0_0 = arith.constant 0 : index
    %c0_1 = arith.constant 0 : index
    %0 = vector.load %arg1[%c0, %c0_0, %c0_1] : memref<1x8x32xf32, #tpu.memory_space<vmem>>, vector<1x8x32xf32>
    %1 = vector.shape_cast %0 : vector<1x8x32xf32> to vector<8x32xf32>
    %c0_2 = arith.constant 0 : index
    %c0_3 = arith.constant 0 : index
    %c0_4 = arith.constant 0 : index
    %2 = vector.load %arg2[%c0_2, %c0_3, %c0_4] : memref<1x8x32xf32, #tpu.memory_space<vmem>>, vector<1x8x32xf32>
    %3 = vector.shape_cast %2 : vector<1x8x32xf32> to vector<8x32xf32>
    %c0_5 = arith.constant 0 : index
    %c0_6 = arith.constant 0 : index
    %c0_7 = arith.constant 0 : index
    %4 = vector.load %arg3[%c0_5, %c0_6, %c0_7] : memref<1x8x32xf32, #tpu.memory_space<vmem>>, vector<1x8x32xf32>
    %5 = vector.shape_cast %4 : vector<1x8x32xf32> to vector<8x32xf32>
    %c0_8 = arith.constant 0 : index
    %c0_9 = arith.constant 0 : index
    %c0_10 = arith.constant 0 : index
    %6 = vector.load %arg4[%c0_8, %c0_9, %c0_10] : memref<1x8x32xf32, #tpu.memory_space<vmem>>, vector<1x8x32xf32>
    %7 = vector.shape_cast %6 : vector<1x8x32xf32> to vector<8x32xf32>
    %8 = arith.addf %1, %7 : vector<8x32xf32>
    %9 = arith.addf %3, %7 : vector<8x32xf32>
    %c0_11 = arith.constant 0 : index
    %c0_12 = arith.constant 0 : index
    %10 = vector.load %arg12[%c0_11, %c0_12] : memref<8x32xf32, #tpu.memory_space<vmem>>, vector<8x32xf32>
    %11 = vector.extract_strided_slice %10 {offsets = [0, 0], sizes = [1, 32], strides = [1, 1]} : vector<8x32xf32> to vector<1x32xf32>
    %12 = vector.extract_strided_slice %10 {offsets = [1, 0], sizes = [1, 32], strides = [1, 1]} : vector<8x32xf32> to vector<1x32xf32>
    %13 = vector.extract_strided_slice %10 {offsets = [2, 0], sizes = [1, 32], strides = [1, 1]} : vector<8x32xf32> to vector<1x32xf32>
    %14 = vector.extract_strided_slice %10 {offsets = [3, 0], sizes = [1, 32], strides = [1, 1]} : vector<8x32xf32> to vector<1x32xf32>
    %15 = vector.extract_strided_slice %10 {offsets = [4, 0], sizes = [1, 32], strides = [1, 1]} : vector<8x32xf32> to vector<1x32xf32>
    %16 = vector.extract_strided_slice %10 {offsets = [5, 0], sizes = [1, 32], strides = [1, 1]} : vector<8x32xf32> to vector<1x32xf32>
    %17 = vector.extract_strided_slice %10 {offsets = [6, 0], sizes = [1, 32], strides = [1, 1]} : vector<8x32xf32> to vector<1x32xf32>
    %18 = vector.extract_strided_slice %10 {offsets = [7, 0], sizes = [1, 32], strides = [1, 1]} : vector<8x32xf32> to vector<1x32xf32>
    %19 = vector.shape_cast %8 : vector<8x32xf32> to vector<1x8x32xf32>
    %20 = vector.shape_cast %9 : vector<8x32xf32> to vector<1x8x32xf32>
    %21 = vector.shape_cast %5 : vector<8x32xf32> to vector<1x8x32xf32>
    %22 = tpu.concatenate %19, %20, %21 in 0 : vector<1x8x32xf32>, vector<1x8x32xf32>, vector<1x8x32xf32> -> vector<3x8x32xf32>
    %c0_13 = arith.constant 0 : index
    %c0_14 = arith.constant 0 : index
    %c0_15 = arith.constant 0 : index
    %23 = vector.load %arg6[%c0_13, %c0_14, %c0_15] : memref<3x32x32xf32, #tpu.memory_space<vmem>>, vector<3x32x32xf32>
    "tpu.trace_start"() <{level = 10 : i32, message = "snd,sdk->snk"}> : () -> ()
    %cst = arith.constant dense<0.000000e+00> : vector<3x8x32xf32>
    %24 = tpu.matmul %22, %23, %cst {dimension_numbers = #tpu.dot_dimension_numbers<[2], [1], [1], [2], [0, 0, 0, 1, 1, 2], [0], [0]>} : vector<3x8x32xf32>, vector<3x32x32xf32>, vector<3x8x32xf32> -> vector<3x8x32xf32>
    "tpu.trace_stop"() : () -> ()
    %c0_16 = arith.constant 0 : index
    %c0_17 = arith.constant 0 : index
    %c0_18 = arith.constant 0 : index
    %25 = vector.load %arg7[%c0_16, %c0_17, %c0_18] : memref<3x1x32xf32, #tpu.memory_space<vmem>>, vector<3x1x32xf32>
    %26 = vector.broadcast %25 : vector<3x1x32xf32> to vector<3x8x32xf32>
    %27 = arith.addf %24, %26 : vector<3x8x32xf32>
    %28 = vector.extract_strided_slice %27 {offsets = [0, 0, 0], sizes = [1, 8, 32], strides = [1, 1, 1]} : vector<3x8x32xf32> to vector<1x8x32xf32>
    %29 = vector.shape_cast %28 : vector<1x8x32xf32> to vector<8x32xf32>
    %30 = vector.shape_cast %29 : vector<8x32xf32> to vector<8x4x8xf32>
    %31 = vector.extract_strided_slice %27 {offsets = [1, 0, 0], sizes = [1, 8, 32], strides = [1, 1, 1]} : vector<3x8x32xf32> to vector<1x8x32xf32>
    %32 = vector.shape_cast %31 : vector<1x8x32xf32> to vector<8x32xf32>
    %33 = vector.shape_cast %32 : vector<8x32xf32> to vector<8x4x8xf32>
    %34 = vector.extract_strided_slice %27 {offsets = [2, 0, 0], sizes = [1, 8, 32], strides = [1, 1, 1]} : vector<3x8x32xf32> to vector<1x8x32xf32>
    %35 = vector.shape_cast %34 : vector<1x8x32xf32> to vector<8x32xf32>
    %36 = vector.shape_cast %35 : vector<8x32xf32> to vector<8x4x8xf32>
    "tpu.trace_start"() <{level = 10 : i32, message = "nhd,mhd->hnm"}> : () -> ()
    %cst_19 = arith.constant dense<0.000000e+00> : vector<4x8x8xf32>
    %37 = tpu.matmul %30, %33, %cst_19 {dimension_numbers = #tpu.dot_dimension_numbers<[2], [2], [0], [0], [0, 1, 0, 0, 1, 0], [1], [1]>} : vector<8x4x8xf32>, vector<8x4x8xf32>, vector<4x8x8xf32> -> vector<4x8x8xf32>
    "tpu.trace_stop"() : () -> ()
    %cst_20 = arith.constant 0.353553385 : f32
    %38 = vector.broadcast %cst_20 : f32 to vector<4x8x8xf32>
    %39 = arith.mulf %37, %38 : vector<4x8x8xf32>
    %c0_21 = arith.constant 0 : index
    %c0_22 = arith.constant 0 : index
    %c0_23 = arith.constant 0 : index
    %c0_24 = arith.constant 0 : index
    %40 = vector.load %arg5[%c0_21, %c0_22, %c0_23, %c0_24] : memref<1x8x8x8xf32, #tpu.memory_space<vmem>>, vector<1x8x8x8xf32>
    %41 = vector.shape_cast %40 : vector<1x8x8x8xf32> to vector<8x8x8xf32>
    %42 = vector.extract_strided_slice %41 {offsets = [0, 0, 0], sizes = [4, 8, 8], strides = [1, 1, 1]} : vector<8x8x8xf32> to vector<4x8x8xf32>
    %cst_25 = arith.constant 9.99999997E-7 : f32
    %43 = vector.broadcast %cst_25 : f32 to vector<4x8x8xf32>
    %44 = arith.maximumf %42, %43 : vector<4x8x8xf32>
    %45 = math.log %44 : vector<4x8x8xf32>
    %46 = arith.addf %45, %39 : vector<4x8x8xf32>
    %47 = vector.extract_strided_slice %41 {offsets = [4, 0, 0], sizes = [4, 8, 8], strides = [1, 1, 1]} : vector<8x8x8xf32> to vector<4x8x8xf32>
    %48 = arith.addf %46, %47 : vector<4x8x8xf32>
    %cst_26 = arith.constant dense<0xFF800000> : vector<4x8xf32>
    %49 = vector.multi_reduction <maximumf>, %48, %cst_26 [2] : vector<4x8x8xf32> to vector<4x8xf32>
    %50 = vector.shape_cast %49 : vector<4x8xf32> to vector<4x8x1xf32>
    %51 = vector.broadcast %50 : vector<4x8x1xf32> to vector<4x8x8xf32>
    %52 = arith.subf %48, %51 : vector<4x8x8xf32>
    %53 = math.exp %52 : vector<4x8x8xf32>
    %cst_27 = arith.constant dense<0.000000e+00> : vector<4x8xf32>
    %54 = vector.multi_reduction <add>, %53, %cst_27 [2] : vector<4x8x8xf32> to vector<4x8xf32>
    %55 = vector.shape_cast %54 : vector<4x8xf32> to vector<4x8x1xf32>
    %56 = tpu.reciprocal %55 : vector<4x8x1xf32> -> vector<4x8x1xf32>
    %57 = vector.broadcast %56 : vector<4x8x1xf32> to vector<4x8x8xf32>
    %58 = arith.mulf %53, %57 : vector<4x8x8xf32>
    "tpu.trace_start"() <{level = 10 : i32, message = "hnm,mhe->nhe"}> : () -> ()
    %cst_28 = arith.constant dense<0.000000e+00> : vector<4x8x8xf32>
    %59 = tpu.matmul %36, %58, %cst_28 {dimension_numbers = #tpu.dot_dimension_numbers<[0], [2], [2], [1], [0, 1, 0, 2, 1, 1], [1], [0]>} : vector<8x4x8xf32>, vector<4x8x8xf32>, vector<4x8x8xf32> -> vector<4x8x8xf32>
    %60 = tpu.transpose %59, [2, 0, 1] : vector<4x8x8xf32> -> vector<8x4x8xf32>
    "tpu.trace_stop"() : () -> ()
    %61 = vector.shape_cast %60 : vector<8x4x8xf32> to vector<8x32xf32>
    %c0_29 = arith.constant 0 : index
    %c0_30 = arith.constant 0 : index
    %62 = vector.load %arg8[%c0_29, %c0_30] : memref<32x32xf32, #tpu.memory_space<vmem>>, vector<32x32xf32>
    %cst_31 = arith.constant dense<0.000000e+00> : vector<8x32xf32>
    %63 = tpu.matmul %61, %62, %cst_31 {dimension_numbers = #tpu.dot_dimension_numbers<[1], [0], [0], [1], [0, 0, 1, 1], [], []>} : vector<8x32xf32>, vector<32x32xf32>, vector<8x32xf32> -> vector<8x32xf32>
    %64 = vector.broadcast %11 : vector<1x32xf32> to vector<8x32xf32>
    %65 = arith.addf %63, %64 : vector<8x32xf32>
    %66 = arith.addf %8, %65 : vector<8x32xf32>
    %cst_32 = arith.constant dense<0.000000e+00> : vector<8xf32>
    %67 = vector.multi_reduction <add>, %66, %cst_32 [1] : vector<8x32xf32> to vector<8xf32>
    %68 = vector.shape_cast %67 : vector<8xf32> to vector<8x1xf32>
    %cst_33 = arith.constant 3.200000e+01 : f32
    %69 = vector.broadcast %cst_33 : f32 to vector<8x1xf32>
    %70 = arith.divf %68, %69 : vector<8x1xf32>
    %71 = vector.broadcast %70 : vector<8x1xf32> to vector<8x32xf32>
    %72 = arith.subf %66, %71 : vector<8x32xf32>
    %73 = arith.mulf %72, %72 : vector<8x32xf32>
    %cst_34 = arith.constant dense<0.000000e+00> : vector<8xf32>
    %74 = vector.multi_reduction <add>, %73, %cst_34 [1] : vector<8x32xf32> to vector<8xf32>
    %75 = vector.shape_cast %74 : vector<8xf32> to vector<8x1xf32>
    %cst_35 = arith.constant 3.200000e+01 : f32
    %76 = vector.broadcast %cst_35 : f32 to vector<8x1xf32>
    %77 = arith.divf %75, %76 : vector<8x1xf32>
    %78 = vector.broadcast %70 : vector<8x1xf32> to vector<8x32xf32>
    %79 = arith.subf %66, %78 : vector<8x32xf32>
    %cst_36 = arith.constant 9.99999974E-6 : f32
    %80 = vector.broadcast %cst_36 : f32 to vector<8x1xf32>
    %81 = arith.addf %77, %80 : vector<8x1xf32>
    %82 = math.rsqrt %81 : vector<8x1xf32>
    %83 = vector.broadcast %82 : vector<8x1xf32> to vector<8x32xf32>
    %84 = arith.mulf %79, %83 : vector<8x32xf32>
    %85 = vector.broadcast %13 : vector<1x32xf32> to vector<8x32xf32>
    %86 = arith.mulf %84, %85 : vector<8x32xf32>
    %87 = vector.broadcast %14 : vector<1x32xf32> to vector<8x32xf32>
    %88 = arith.addf %86, %87 : vector<8x32xf32>
    %89 = arith.addf %1, %88 : vector<8x32xf32>
    %cst_37 = arith.constant dense<0.000000e+00> : vector<8xf32>
    %90 = vector.multi_reduction <add>, %89, %cst_37 [1] : vector<8x32xf32> to vector<8xf32>
    %91 = vector.shape_cast %90 : vector<8xf32> to vector<8x1xf32>
    %cst_38 = arith.constant 3.200000e+01 : f32
    %92 = vector.broadcast %cst_38 : f32 to vector<8x1xf32>
    %93 = arith.divf %91, %92 : vector<8x1xf32>
    %94 = vector.broadcast %93 : vector<8x1xf32> to vector<8x32xf32>
    %95 = arith.subf %89, %94 : vector<8x32xf32>
    %96 = arith.mulf %95, %95 : vector<8x32xf32>
    %cst_39 = arith.constant dense<0.000000e+00> : vector<8xf32>
    %97 = vector.multi_reduction <add>, %96, %cst_39 [1] : vector<8x32xf32> to vector<8xf32>
    %98 = vector.shape_cast %97 : vector<8xf32> to vector<8x1xf32>
    %cst_40 = arith.constant 3.200000e+01 : f32
    %99 = vector.broadcast %cst_40 : f32 to vector<8x1xf32>
    %100 = arith.divf %98, %99 : vector<8x1xf32>
    %101 = vector.broadcast %93 : vector<8x1xf32> to vector<8x32xf32>
    %102 = arith.subf %89, %101 : vector<8x32xf32>
    %cst_41 = arith.constant 9.99999974E-6 : f32
    %103 = vector.broadcast %cst_41 : f32 to vector<8x1xf32>
    %104 = arith.addf %100, %103 : vector<8x1xf32>
    %105 = math.rsqrt %104 : vector<8x1xf32>
    %106 = vector.broadcast %105 : vector<8x1xf32> to vector<8x32xf32>
    %107 = arith.mulf %102, %106 : vector<8x32xf32>
    %108 = vector.broadcast %15 : vector<1x32xf32> to vector<8x32xf32>
    %109 = arith.mulf %107, %108 : vector<8x32xf32>
    %110 = vector.broadcast %16 : vector<1x32xf32> to vector<8x32xf32>
    %111 = arith.addf %109, %110 : vector<8x32xf32>
    %c0_42 = arith.constant 0 : index
    %c0_43 = arith.constant 0 : index
    %112 = vector.load %arg9[%c0_42, %c0_43] : memref<32x64xf32, #tpu.memory_space<vmem>>, vector<32x64xf32>
    %cst_44 = arith.constant dense<0.000000e+00> : vector<8x64xf32>
    %113 = tpu.matmul %111, %112, %cst_44 {dimension_numbers = #tpu.dot_dimension_numbers<[1], [0], [0], [1], [0, 0, 1, 1], [], []>} : vector<8x32xf32>, vector<32x64xf32>, vector<8x64xf32> -> vector<8x64xf32>
    %c0_45 = arith.constant 0 : index
    %c0_46 = arith.constant 0 : index
    %114 = vector.load %arg10[%c0_45, %c0_46] : memref<1x64xf32, #tpu.memory_space<vmem>>, vector<1x64xf32>
    %115 = vector.broadcast %114 : vector<1x64xf32> to vector<8x64xf32>
    %116 = arith.addf %113, %115 : vector<8x64xf32>
    %cst_47 = arith.constant 0.000000e+00 : f32
    %117 = vector.broadcast %cst_47 : f32 to vector<8x64xf32>
    %118 = arith.maximumf %116, %117 : vector<8x64xf32>
    %c0_48 = arith.constant 0 : index
    %c0_49 = arith.constant 0 : index
    %119 = vector.load %arg11[%c0_48, %c0_49] : memref<64x32xf32, #tpu.memory_space<vmem>>, vector<64x32xf32>
    %cst_50 = arith.constant dense<0.000000e+00> : vector<8x32xf32>
    %120 = tpu.matmul %118, %119, %cst_50 {dimension_numbers = #tpu.dot_dimension_numbers<[1], [0], [0], [1], [0, 0, 1, 1], [], []>} : vector<8x64xf32>, vector<64x32xf32>, vector<8x32xf32> -> vector<8x32xf32>
    %121 = vector.broadcast %12 : vector<1x32xf32> to vector<8x32xf32>
    %122 = arith.addf %120, %121 : vector<8x32xf32>
    %123 = arith.addf %111, %122 : vector<8x32xf32>
    %cst_51 = arith.constant dense<0.000000e+00> : vector<8xf32>
    %124 = vector.multi_reduction <add>, %123, %cst_51 [1] : vector<8x32xf32> to vector<8xf32>
    %125 = vector.shape_cast %124 : vector<8xf32> to vector<8x1xf32>
    %cst_52 = arith.constant 3.200000e+01 : f32
    %126 = vector.broadcast %cst_52 : f32 to vector<8x1xf32>
    %127 = arith.divf %125, %126 : vector<8x1xf32>
    %128 = vector.broadcast %127 : vector<8x1xf32> to vector<8x32xf32>
    %129 = arith.subf %123, %128 : vector<8x32xf32>
    %130 = arith.mulf %129, %129 : vector<8x32xf32>
    %cst_53 = arith.constant dense<0.000000e+00> : vector<8xf32>
    %131 = vector.multi_reduction <add>, %130, %cst_53 [1] : vector<8x32xf32> to vector<8xf32>
    %132 = vector.shape_cast %131 : vector<8xf32> to vector<8x1xf32>
    %cst_54 = arith.constant 3.200000e+01 : f32
    %133 = vector.broadcast %cst_54 : f32 to vector<8x1xf32>
    %134 = arith.divf %132, %133 : vector<8x1xf32>
    %135 = vector.broadcast %127 : vector<8x1xf32> to vector<8x32xf32>
    %136 = arith.subf %123, %135 : vector<8x32xf32>
    %cst_55 = arith.constant 9.99999974E-6 : f32
    %137 = vector.broadcast %cst_55 : f32 to vector<8x1xf32>
    %138 = arith.addf %134, %137 : vector<8x1xf32>
    %139 = math.rsqrt %138 : vector<8x1xf32>
    %140 = vector.broadcast %139 : vector<8x1xf32> to vector<8x32xf32>
    %141 = arith.mulf %136, %140 : vector<8x32xf32>
    %142 = vector.broadcast %17 : vector<1x32xf32> to vector<8x32xf32>
    %143 = arith.mulf %141, %142 : vector<8x32xf32>
    %144 = vector.broadcast %18 : vector<1x32xf32> to vector<8x32xf32>
    %145 = arith.addf %143, %144 : vector<8x32xf32>
    %c0_56 = arith.constant 0 : index
    %c0_57 = arith.constant 0 : index
    %c0_58 = arith.constant 0 : index
    %146 = vector.load %arg13[%c0_56, %c0_57, %c0_58] : memref<1x8x32xf32, #tpu.memory_space<vmem>>, vector<1x8x32xf32>
    %147 = vector.shape_cast %146 : vector<1x8x32xf32> to vector<8x32xf32>
    %148 = vector.shape_cast %145 : vector<8x32xf32> to vector<1x8x32xf32>
    tpu.vector_store %arg13[%c0_56, %c0_57, %c0_58], %148 {strides = array<i32>} : memref<1x8x32xf32, #tpu.memory_space<vmem>>, vector<1x8x32xf32>,
    return
  }
  func.func @transform_0(%arg0: i32) -> (i32, i32, i32) {
    %c0_i32 = arith.constant 0 : i32
    %c0_i32_0 = arith.constant 0 : i32
    %c0_i32_1 = arith.constant 0 : i32
    return %arg0, %c0_i32, %c0_i32_0 : i32, i32, i32
  }
  func.func @transform_1(%arg0: i32) -> (i32, i32, i32) {
    %c0_i32 = arith.constant 0 : i32
    %c0_i32_0 = arith.constant 0 : i32
    %c0_i32_1 = arith.constant 0 : i32
    return %arg0, %c0_i32, %c0_i32_0 : i32, i32, i32
  }
  func.func @transform_2(%arg0: i32) -> (i32, i32, i32) {
    %c0_i32 = arith.constant 0 : i32
    %c0_i32_0 = arith.constant 0 : i32
    %c0_i32_1 = arith.constant 0 : i32
    return %arg0, %c0_i32, %c0_i32_0 : i32, i32, i32
  }
  func.func @transform_3(%arg0: i32) -> (i32, i32, i32) {
    %c0_i32 = arith.constant 0 : i32
    %c0_i32_0 = arith.constant 0 : i32
    %c0_i32_1 = arith.constant 0 : i32
    return %arg0, %c0_i32, %c0_i32_0 : i32, i32, i32
  }
  func.func @transform_4(%arg0: i32) -> (i32, i32, i32, i32) {
    %c0_i32 = arith.constant 0 : i32
    %c0_i32_0 = arith.constant 0 : i32
    %c0_i32_1 = arith.constant 0 : i32
    %c0_i32_2 = arith.constant 0 : i32
    return %arg0, %c0_i32, %c0_i32_0, %c0_i32_1 : i32, i32, i32, i32
  }
  func.func @transform_5(%arg0: i32) -> (i32, i32, i32) {
    %c0_i32 = arith.constant 0 : i32
    %c0_i32_0 = arith.constant 0 : i32
    %c0_i32_1 = arith.constant 0 : i32
    %c0_i32_2 = arith.constant 0 : i32
    return %c0_i32, %c0_i32_0, %c0_i32_1 : i32, i32, i32
  }
  func.func @transform_6(%arg0: i32) -> (i32, i32, i32) {
    %c0_i32 = arith.constant 0 : i32
    %c0_i32_0 = arith.constant 0 : i32
    %c0_i32_1 = arith.constant 0 : i32
    %c0_i32_2 = arith.constant 0 : i32
    return %c0_i32, %c0_i32_0, %c0_i32_1 : i32, i32, i32
  }
  func.func @transform_7(%arg0: i32) -> (i32, i32) {
    %c0_i32 = arith.constant 0 : i32
    %c0_i32_0 = arith.constant 0 : i32
    %c0_i32_1 = arith.constant 0 : i32
    return %c0_i32, %c0_i32_0 : i32, i32
  }
  func.func @transform_8(%arg0: i32) -> (i32, i32) {
    %c0_i32 = arith.constant 0 : i32
    %c0_i32_0 = arith.constant 0 : i32
    %c0_i32_1 = arith.constant 0 : i32
    return %c0_i32, %c0_i32_0 : i32, i32
  }
  func.func @transform_9(%arg0: i32) -> (i32, i32) {
    %c0_i32 = arith.constant 0 : i32
    %c0_i32_0 = arith.constant 0 : i32
    %c0_i32_1 = arith.constant 0 : i32
    return %c0_i32, %c0_i32_0 : i32, i32
  }
  func.func @transform_10(%arg0: i32) -> (i32, i32) {
    %c0_i32 = arith.constant 0 : i32
    %c0_i32_0 = arith.constant 0 : i32
    %c0_i32_1 = arith.constant 0 : i32
    return %c0_i32, %c0_i32_0 : i32, i32
  }
  func.func @transform_11(%arg0: i32) -> (i32, i32) {
    %c0_i32 = arith.constant 0 : i32
    %c0_i32_0 = arith.constant 0 : i32
    %c0_i32_1 = arith.constant 0 : i32
    return %c0_i32, %c0_i32_0 : i32, i32
  }
  func.func @transform_12(%arg0: i32) -> (i32, i32, i32) {
    %c0_i32 = arith.constant 0 : i32
    %c0_i32_0 = arith.constant 0 : i32
    %c0_i32_1 = arith.constant 0 : i32
    return %arg0, %c0_i32, %c0_i32_0 : i32, i32, i32
  }
}

</mosaic_0001>

<bundles_post_ra>
// kernel: tpu_custom_call.1
= control target key start
LH: loop header
LB: loop body
LE: loop exit
PB: predicated region body
PF: predicated region fallthrough
CT: control target
= control target key end

     0   :  { %s3038_s0 = inlined_call_operand.hbm [shape: f32[2,8,32], index: 0, kind: input, shape index: {}]   ;;  %s3039_s1 = inlined_call_operand.hbm [shape: f32[2,8,32], index: 1, kind: input, shape index: {}]   ;;  %s3040_s2 = inlined_call_operand.hbm [shape: f32[2,8,32], index: 2, kind: input, shape index: {}]   ;;  %s3041_s3 = inlined_call_operand.hbm [shape: f32[2,8,32], index: 3, kind: input, shape index: {}]   ;;  %s3042_s4 = inlined_call_operand.hbm [shape: f32[2,8,8,8], index: 4, kind: input, shape index: {}]   ;;  %s3043_s5 = inlined_call_operand.vmem [shape: f32[3,32,32], index: 5, kind: input, shape index: {}]   ;;  %s3044_s6 = inlined_call_operand.hbm [shape: f32[3,1,32], index: 6, kind: input, shape index: {}]   ;;  %s3045_s7 = inlined_call_operand.hbm [shape: f32[32,32], index: 7, kind: input, shape index: {}]   ;;  %s3046_s8 = inlined_call_operand.hbm [shape: f32[32,64], index: 8, kind: input, shape index: {}]   ;;  %s3047_s9 = inlined_call_operand.vmem [shape: f32[1,64], index: 9, kind: input, shape index: {}]   ;;  %s3048_s10 = inlined_call_operand.vmem [shape: f32[64,32], index: 10, kind: input, shape index: {}]   ;;  %s3049_s11 = inlined_call_operand.vmem [shape: f32[8,32], index: 11, kind: input, shape index: {}]   ;;  %s3050_s12 = inlined_call_operand.hbm [shape: f32[2,8,32], index: 12, kind: output, shape index: {}]  }
   0x1   :  { %3067 = sst [smem:[#allocation31_spill]] %s3039_s1 }
   0x2   :  { %3068 = sst [smem:[#allocation32_spill]] %s3043_s5 }
   0x3   :  { %3069 = sst [smem:[#allocation33_spill]] %s3044_s6 }
   0x4   :  { %3070 = sst [smem:[#allocation34_spill]] %s3047_s9 }
   0x5   :  { %3071 = sst [smem:[#allocation35_spill]] %s3048_s10 }
   0x6   :  { %3072 = sst [smem:[#allocation36_spill]] %s3049_s11 }
   0x7   :  { %3073 = sst [smem:[#allocation37_spill]] %s3050_s12 }
   0x8   :  { %17 = vsyncpa [#allocation3], 0 }
   0x9   :  { %19 = vsyncpa [#allocation3 + $0x1], 0 }
   0xa   :  { %20 = vsyncpa [#allocation6], 0 }
   0xb   :  { %22 = vsyncpa [#allocation6 + $0x1], 0 }
   0xc   :  { %23 = vsyncpa [#allocation9], 0 }
   0xd   :  { %25 = vsyncpa [#allocation9 + $0x1], 0 }
   0xe   :  { %26 = vsyncpa [#allocation12], 0 }
   0xf   :  { %27 = vsyncpa [#allocation15], 0 }
  0x10   :  { %28 = vsyncpa [#allocation4], 0 }
  0x11   :  { %30 = vsyncpa [#allocation4 + $0x1], 0  ;;  %s2587_s21 = smov 0   ;;  %s2589_s22 = smov 0  }
  0x12   :  { %s2591_s23 = smov 0   ;;  %s2593_s24 = smov 0  }
  0x13 LB: > { %3074 = sst [smem:[#allocation23_spill]] %s2492_s21  ;;  %s2608_s25 = sadd.s32 4294967295, %s2504_s24   ;;  %s2504_s24 = sphi %s2593_s24, %s3108_s24   ;;  %s2500_s23 = sphi %s2591_s23, %s3110_s23   ;;  %s2496_s22 = sphi %s2589_s22, %s3112_s22   ;;  %s2492_s21 = sphi %s2587_s21, %s3111_s21  }
  0x14   : > { %3075 = sst [smem:[#allocation24_spill]] %s2500_s23  ;;  %s1978_s26 = sadd.s32 4294967294, %s2504_s24  }
  0x15   : > { %3076 = sst [smem:[#allocation25_spill]] %s2608_s25  ;;  %p56_p0 = scmp.ne.s32.totalorder %s2496_s22, %s2492_s21 }
  0x16   : > { %p3060_p1 = scmp.eq.s32.totalorder %s2608_s25, 0  ;;  %p331_p2 = scmp.eq.s32.totalorder %s2608_s25, 1 }
  0x17   : > { %p337_p3 = scmp.eq.s32.totalorder %s1978_s26, 1  ;;  %p1979_p5 = scmp.ge.s32.totalorder %s2504_s24, 1 }
  0x18   : > { %p2617_p4 = por %p3060_p1, %p56_p0  ;;  %p344_p7 = scmp.lt.s32.totalorder %s2504_s24, 3 }
  0x19   : > { %p2622_p6 = por %p337_p3, %p56_p0  ;;  %s3081_s6 = sld [smem:[#allocation33_spill]] }
  0x1a   : > { %s3077_s27 = scalar_select %p2617_p4, 1, 0 }
  0x1b   : > { %s3079_s28 = scalar_select %p2622_p6, 1, 0 }
  0x1c   : > { %3078 = sst [smem:[#allocation26_spill]] %s3077_s27  ;;  %p2630_p8 = pnand %p1979_p5, %p344_p7 }
  0x1d   : > { %3080 = sst [smem:[#allocation27_spill]] %s3079_s28  ;;  %s2506_s15 = smov [#allocation11]  }
  0x1e   : > { %p2052_p9 = pneg %p2630_p8  ;;  %s360_s16 = sshll.u32 %s2506_s15, 4  ;;  %s361_s16 = int_to_ptr.vmem [resolvable:$true] %s360_s16 }
  0x1f   : > { %s358_s13 = sshll.u32 %s3081_s6, 4  ;;  %s2644_s18 = sadd.s32 1, %s2504_s24   ;;  %s359_s13 = int_to_ptr.hbm [resolvable:$true] %s358_s13 }
  0x20   : > { %p2638_p10 = pnand %p2052_p9, %p3060_p1  ;;  %3084 = sst [smem:[#allocation28_spill]] %s2644_s18 }
  0x21   : > { %s2507_s19 = smov 16   ;;  %s2508_s20 = smov 1  }
  0x22   : > { %2055 = dma.hbm_to_vmem [thread:$0]  (!%p2638_p10), %s359_s13, 48, %s361_s16, [#allocation12], %s2507_s19, %s2507_s19, %s2508_s20  }
  0x23   : > { %s40_s26 = ssub.s32 %s2504_s24, %s2644_s18  ;;  %s43_s29 = sadd.s32 1, %s2500_s23 }
  0x24   : > { %p41_p12 = scmp.eq.s32.totalorder %s40_s26, 0  ;;  %p50_p13 = scmp.ne.s32.totalorder %s2500_s23, %s2496_s22 }
  0x25   : > { %p51_p0 = scmp.eq.s32.totalorder %s2504_s24, 0  ;;  %p2085_p3 = scmp.lt.s32.totalorder %s2504_s24, 2 }
  0x26   : > { %s2656_s30 = scalar_select %p41_p12, %s2500_s23, %s43_s29  }
  0x27   : > { %p52_p5 = por %p51_p0, %p50_p13  ;;  %p2660_p7 = por %p331_p2, %p50_p13 }
  0x28   : > { %3085 = sst [smem:[#allocation29_spill]] %s2656_s30  ;;  %s2665_s6 = sand.u32 1, %s2500_s23  }
  0x29   : > { %s3086_s15 = scalar_select %p2660_p7, 1, 0 }
  0x2a   : > { %s2668_s28 = sshll.u32 %s2504_s24, 3  ;;  %s2671_s13 = sshll.u32 %s2665_s6, 3 }
  0x2b   : > { %3087 = sst [smem:[#allocation30_spill]] %s3086_s15  ;;  %p2673_p9 = pnand %p2085_p3, %p52_p5 }
  0x2c   : > { %s430_s19 = sand.u32 1, %s2504_s24   ;;  %s3089_s1 = sld [smem:[#allocation31_spill]] }
  0x2d   : > { %s434_s30 = scalar_lea.vmem [#allocation5], %s2671_s13  ;;  %s2683_s21 = scalar_lea.sflag [#allocation6], %s430_s19 }
  0x2e   : > { %s442_s23 = sshll.u32 %s434_s30, 4  ;;  %p2687_p12 = pneg %p2673_p9  ;;  %s443_s23 = int_to_ptr.vmem [resolvable:$true] %s442_s23 }
  0x32   : > { %s438_s29 = scalar_lea.hbm %s3089_s1, %s2668_s28  ;;  %s2219_s26 = scalar_lea.hbm %s3089_s1, 16 }
  0x33   : > { %s440_s18 = sshll.u32 %s438_s29, 4  ;;  %s441_s18 = int_to_ptr.hbm [resolvable:$true] %s440_s18 }
  0x34   : > { %s2212_s15 = sshra.s32 %s441_s18, 4  ;;  %s2213_s15 = int_to_ptr.hbm [resolvable:$true] %s2212_s15 }
  0x35   : > { %s2214_s12 = scalar_lea.hbm %s2213_s15, 8  ;;  %p2220_p3 = scmp.lt.s32.totalorder %s2213_s15, %s3089_s1 }
  0x36   : > { %p2215_p2 = scmp.ne.s32.totalorder %s2213_s15, %s2214_s12  ;;  %p2221_p5 = scmp.lt.s32.totalorder %s2219_s26, %s2214_s12 }
  0x38   : > { %p2217_p13 = pnand %p2687_p12, %p2215_p2  ;;  %p2222_p11 = por %p2221_p5, %p2220_p3 }
  0x3a   : > { %p2218_p0 = pneg %p2217_p13 }
  0x3c   : > { %p2223_p1 = pnand %p2222_p11, %p2218_p0 }
  0x3e   : > { %2226 = shalt.err (!%p2223_p1)
}
  0x3f   : > { %2068 = dma.hbm_to_vmem [thread:$0]  (!%p2673_p9), %s441_s18, 128, %s443_s23, %s2683_s21  }
  0x40   : > { %s476_s20 = scalar_lea.hbm %s3041_s3, %s2668_s28  ;;  %s472_s25 = scalar_lea.vmem [#allocation8], %s2671_s13 }
  0x41   : > { %s478_s30 = sshll.u32 %s476_s20, 4  ;;  %s480_s27 = sshll.u32 %s472_s25, 4  ;;  %s479_s30 = int_to_ptr.hbm [resolvable:$true] %s478_s30  ;;  %s481_s27 = int_to_ptr.vmem [resolvable:$true] %s480_s27 }
  0x42   : > { %s2707_s10 = scalar_lea.sflag [#allocation9], %s430_s19  ;;  %s2242_s12 = sshra.s32 %s479_s30, 4  ;;  %s2243_s12 = int_to_ptr.hbm [resolvable:$true] %s2242_s12 }
  0x43   : > { %s2244_s15 = scalar_lea.hbm %s2243_s12, 8  ;;  %s2249_s18 = scalar_lea.hbm %s3041_s3, 16 }
  0x44   : > { %p2245_p1 = scmp.ne.s32.totalorder %s2243_s12, %s2244_s15  ;;  %p2250_p13 = scmp.lt.s32.totalorder %s2243_s12, %s3041_s3 }
  0x45   : > { %p2251_p0 = scmp.lt.s32.totalorder %s2249_s18, %s2244_s15 }
  0x46   : > { %p2247_p11 = pnand %p2245_p1, %p2687_p12 }
  0x47   : > { %p2252_p3 = por %p2251_p0, %p2250_p13 }
  0x48   : > { %p2248_p2 = pneg %p2247_p11 }
  0x4a   : > { %p2253_p5 = pnand %p2252_p3, %p2248_p2 }
  0x4c   : > { %2256 = shalt.err (!%p2253_p5)
}
  0x4d   : > { %2074 = dma.hbm_to_vmem [thread:$0]  (!%p2673_p9), %s479_s30, 128, %s481_s27, %s2707_s10  }
  0x4e   : > { %s372_s29 = sshll.u32 %s3045_s7, 4  ;;  %s2509_s20 = smov [#allocation13]   ;;  %s373_s29 = int_to_ptr.hbm [resolvable:$true] %s372_s29 }
  0x4f   : > { %s374_s26 = sshll.u32 %s2509_s20, 4  ;;  %s386_s23 = sshll.u32 %s3046_s8, 4  ;;  %s375_s26 = int_to_ptr.vmem [resolvable:$true] %s374_s26  ;;  %s387_s23 = int_to_ptr.hbm [resolvable:$true] %s386_s23 }
  0x50   : > { %s3066_s18 = smov 128   ;;  %s2511_s5 = smov 8  }
  0x51   : > { %2058 = dma.hbm_to_vmem [thread:$0]  (!%p2638_p10), %s373_s29, 512, %s375_s26, [#allocation12], %s3066_s18, %s3066_s18, %s2511_s5  }
  0x52   : > { %s2512_s27 = smov [#allocation14]   ;;  %s419_s19 = scalar_lea.hbm %s3038_s0, %s2668_s28 }
  0x53   : > { %s388_s30 = sshll.u32 %s2512_s27, 4  ;;  %s415_s20 = scalar_lea.vmem [#allocation2], %s2671_s13  ;;  %s389_s30 = int_to_ptr.vmem [resolvable:$true] %s388_s30 }
  0x54   : > { %2061 = dma.hbm_to_vmem [thread:$0]  (!%p2638_p10), %s387_s23, 512, %s389_s30, [#allocation15], %s3066_s18, %s3066_s18, %s2511_s5  }
  0x55   : > { %s423_s12 = sshll.u32 %s415_s20, 4  ;;  %s421_s15 = sshll.u32 %s419_s19, 4  ;;  %s424_s12 = int_to_ptr.vmem [resolvable:$true] %s423_s12  ;;  %s422_s15 = int_to_ptr.hbm [resolvable:$true] %s421_s15 }
  0x56   : > { %s412_s29 = scalar_lea.sflag [#allocation3], %s2665_s6  ;;  %s2332_s26 = sshra.s32 %s422_s15, 4  ;;  %s2333_s26 = int_to_ptr.hbm [resolvable:$true] %s2332_s26 }
  0x57   : > { %s2334_s1 = scalar_lea.hbm %s2333_s26, 8  ;;  %s2339_s23 = scalar_lea.hbm %s3038_s0, 16 }
  0x58   : > { %p2335_p1 = scmp.ne.s32.totalorder %s2333_s26, %s2334_s1  ;;  %p2340_p10 = scmp.lt.s32.totalorder %s2333_s26, %s3038_s0 }
  0x59   : > { %p2341_p13 = scmp.lt.s32.totalorder %s2339_s23, %s2334_s1 }
  0x5a   : > { %p2337_p11 = pnand %p2335_p1, %p2687_p12 }
  0x5b   : > { %p2342_p0 = por %p2341_p13, %p2340_p10 }
  0x5c   : > { %p2338_p2 = pneg %p2337_p11 }
  0x5e   : > { %p2343_p3 = pnand %p2342_p0, %p2338_p2 }
  0x60   : > { %2346 = shalt.err (!%p2343_p3)
}
  0x61   : > { %2065 = dma.hbm_to_vmem [thread:$0]  (!%p2673_p9), %s422_s15, 128, %s424_s12, %s412_s29  }
  0x62   : > { %s457_s20 = scalar_lea.hbm %s3040_s2, %s2668_s28  ;;  %s453_s17 = scalar_lea.vmem [#allocation7], %s2671_s13 }
  0x63   : > { %s461_s27 = sshll.u32 %s453_s17, 4  ;;  %s459_s18 = sshll.u32 %s457_s20, 4  ;;  %s462_s27 = int_to_ptr.vmem [resolvable:$true] %s461_s27  ;;  %s460_s18 = int_to_ptr.hbm [resolvable:$true] %s459_s18 }
  0x64   : > { %s1992_s1 = sshll.u32 %s2665_s6, 6  ;;  %s2362_s26 = sshra.s32 %s460_s18, 4  ;;  %s2363_s26 = int_to_ptr.hbm [resolvable:$true] %s2362_s26 }
  0x65   : > { %s2364_s23 = scalar_lea.hbm %s2363_s26, 8  ;;  %s2369_s12 = scalar_lea.hbm %s3040_s2, 16 }
  0x66   : > { %p2365_p5 = scmp.ne.s32.totalorder %s2363_s26, %s2364_s23  ;;  %p2370_p2 = scmp.lt.s32.totalorder %s2363_s26, %s3040_s2 }
  0x67   : > { %p2371_p10 = scmp.lt.s32.totalorder %s2369_s12, %s2364_s23 }
  0x68   : > { %p2367_p1 = pnand %p2365_p5, %p2687_p12 }
  0x69   : > { %p2372_p13 = por %p2371_p10, %p2370_p2 }
  0x6a   : > { %p2368_p11 = pneg %p2367_p1 }
  0x6c   : > { %p2373_p0 = pnand %p2372_p13, %p2368_p11 }
  0x6e   : > { %2376 = shalt.err (!%p2373_p0)
}
  0x6f   : > { %2071 = dma.hbm_to_vmem [thread:$0]  (!%p2673_p9), %s460_s18, 128, %s462_s27, %s2683_s21  }
  0x70   : > { %s2027_s6 = sshll.u32 %s2504_s24, 6  ;;  %s491_s19 = scalar_lea.vmem [#allocation10], %s1992_s1 }
  0x71   : > { %s496_s25 = scalar_lea.hbm %s3042_s4, %s2027_s6  ;;  %s499_s20 = sshll.u32 %s491_s19, 4  ;;  %s500_s20 = int_to_ptr.vmem [resolvable:$true] %s499_s20 }
  0x72   : > { %s497_s17 = sshll.u32 %s496_s25, 4  ;;  %s2399_s21 = scalar_lea.hbm %s3042_s4, 128  ;;  %s498_s17 = int_to_ptr.hbm [resolvable:$true] %s497_s17 }
  0x73   : > { %s2392_s26 = sshra.s32 %s498_s17, 4  ;;  %s2393_s26 = int_to_ptr.hbm [resolvable:$true] %s2392_s26 }
  0x74   : > { %s2394_s23 = scalar_lea.hbm %s2393_s26, 64  ;;  %p2400_p11 = scmp.lt.s32.totalorder %s2393_s26, %s3042_s4 }
  0x75   : > { %p2395_p3 = scmp.ne.s32.totalorder %s2393_s26, %s2394_s23  ;;  %p2401_p2 = scmp.lt.s32.totalorder %s2399_s21, %s2394_s23 }
  0x77   : > { %p2397_p5 = pnand %p2395_p3, %p2687_p12  ;;  %p2402_p10 = por %p2401_p2, %p2400_p11 }
  0x79   : > { %p2398_p1 = pneg %p2397_p5 }
  0x7b   : > { %p2403_p13 = pnand %p2402_p10, %p2398_p1 }
  0x7d   : > { %2406 = shalt.err (!%p2403_p13)
}
  0x7e   : > { %s3091_s1 = smov 128   ;;  %511 = sbr.rel (%p2630_p8) target bundleno = 2780 (0xadc), region = 68 }
  0x7f   : > { %2077 = dma.hbm_to_vmem [thread:$0]  (!%p2673_p9), %s498_s17, 1024, %s500_s20, %s2707_s10, %s3091_s1, %s3091_s1, %s2511_s5  }
  0x80   : > { %s2790_s12 = sand.u32 (!%p2630_p8), 1, %s2496_s22  }
  0x81   : > { %s2793_s15 = sshll.u32 (!%p2630_p8), %s2790_s12, 3  ;;  %s514_s29 = scalar_lea.sflag (!%p2630_p8), [#allocation3], %s2790_s12 }
  0x82   : > { %s517_s6 = scalar_lea.vmem (!%p2630_p8), [#allocation2], %s2793_s15 }
  0x83   : > { %2467 = dma.done.wait (%p2617_p4), %s514_s29, 128  }
  0x84   : > { %2469 = vsyncadd (%p2617_p4), %s514_s29, 4294967168  ;;  %s3093_s16 = sld [smem:[#allocation25_spill]]  ;;  %s527_s5 = scalar_lea.vmem [#allocation5], %s2793_s15 }
  0x8a   : > { %s523_s14 = sand.u32 1, %s3093_s16  }
  0x8b   : > { %s524_s10 = scalar_lea.sflag [#allocation6], %s523_s14 }
  0x8c   : > { %2471 = dma.done.wait (%p2617_p4), %s524_s10, 256  }
  0x8d   : > { %2473 = vsyncadd (%p2617_p4), %s524_s10, 4294967040  ;;  %s537_s28 = scalar_lea.vmem [#allocation7], %s2793_s15  ;;  %s544_s13 = scalar_lea.sflag [#allocation9], %s523_s14 }
  0x8e   : > { %s547_s25 = scalar_lea.vmem [#allocation8], %s2793_s15 }
  0x8f   : > { %2475 = dma.done.wait (%p2617_p4), %s544_s13, 1152  }
  0x90   : > { %2477 = vsyncadd (%p2617_p4), %s544_s13, 4294966144  ;;  %s2000_s19 = sshll.u32 %s2790_s12, 6  ;;  %p3094_p8 = scmp.eq.s32.totalorder %s3093_s16, 0 }
  0x91   : > { %s2814_s20 = scalar_lea.vmem [#allocation10], %s2000_s19 }
  0x92   : > { %2479 = dma.done.wait (%p3094_p8), [#allocation12], 560   ;;  %p3095_p9 = pmov %p3094_p8 }
  0x93   : > { %p3096_p12 = pmov %p3094_p8 }
  0x94   : > { %2481 = vsyncadd (%p3095_p9), [#allocation12], 4294966736 }
  0x95   : > { %2483 = dma.done.wait (%p3096_p12), [#allocation15], 512   ;;  %p3097_p0 = pmov %p3094_p8 }
  0x96   : > { %s3098_s23 = sld [smem:[#allocation32_spill]]  ;;  %v2830_v2 = vld [vmem:[%s517_s6] sm:$0xff]  ;;  %v637_v4 = vld [vmem:[%s547_s25] sm:$0xff]  ;;  %vm665_vm0 = vcmask 261120   ;;  %s2513_s26 = smov 112   ;;  %vm890_vm1 = vcmask 64512  }
  0x97   : > { %2485 = vsyncadd (%p3097_p0), [#allocation15], 4294966784  ;;  %v2839_v6 = vadd.f32 %v637_v4, %v2830_v2  ;;  %v635_v9 = vld [vmem:[%s527_s5] sm:$0xff]  ;;  %v2146_v13 = vld [vmem:[#allocation11] ss:$0 sm:$0xff]  ;;  %s2514_s5 = smov 120  }
  0x98   : > { %v639_v11 = vadd.f32 %v637_v4, %v635_v9  ;;  %v2147_v16 = vld [vmem:[#allocation11 + $0x1] ss:$0 sm:$0xff]  ;;  %v985_v43 = vld [vmem:[%s2814_s20 + $0x10] sm:$0xff]  ;;  %v986_v45 = vld [vmem:[%s2814_s20 + $0x18] sm:$0xff]  ;;  %s2520_s6 = smov 8   ;;  %s3100_s25 = sld [smem:[#allocation36_spill]] }
  0x99   : > { %v983_v31 = vld [vmem:[%s2814_s20] sm:$0xff]  ;;  %v993_v47 = vmax.f32 %v985_v43, 1e-06  ;;  %v994_v49 = vmax.f32 %v986_v45, 1e-06  ;;  %v984_v50 = vld [vmem:[%s2814_s20 + $0x8] sm:$0xff] }
  0x9a   : > { %v991_v32 = vmax.f32 %v983_v31, 1e-06  ;;  %v987_v37 = vld [vmem:[%s2814_s20 + $0x20] sm:$0xff]  ;;  %v992_v51 = vmax.f32 %v984_v50, 1e-06  ;;  %v989_v61 = vld [vmem:[%s2814_s20 + $0x30] sm:$0xff] }
  0x9b   : > { %v636_v48 = vld [vmem:[%s537_s28] sm:$0xff]  ;;  %v990_v63 = vld [vmem:[%s2814_s20 + $0x38] sm:$0xff]  ;;  %s2518_s28 = smov 16   ;;  %s3102_s19 = sld [smem:[#allocation34_spill]] }
  0x9c   : > { %s3099_s30 = smov %s3098_s23  ;;  %v644_v0 = vld [vmem:[%s3098_s23 + $0x18] sm:$0xff]  ;;  %s2515_s23 = smov 104   ;;  %2150 = vlog2.f32 %v991_v32  ;;  %v988_v9 = vld [vmem:[%s2814_s20 + $0x28] sm:$0xff] }
  0x9d   : > { %v643_v1 = vld [vmem:[%s3099_s30 + $0x10] sm:$0xff]  ;;  %681 = vmatpush.msra.mxu1 %v644_v0  ;;  %v642_v3 = vld [vmem:[%s3099_s30 + $0x8] sm:$0xff]  ;;  %v641_v5 = vld [vmem:[%s3099_s30] sm:$0xff]  ;;  %2152 = vlog2.f32 %v993_v47  ;;  %s2519_s20 = smov 24   ;;  %s2024_s17 = sshll.u32 %s3093_s16, 3 }
  0x9e   : > { %v648_v7 = vld [vmem:[%s3099_s30 + $0x38] sm:$0xff]  ;;  %v647_v8 = vld [vmem:[%s3099_s30 + $0x30] sm:$0xff]  ;;  %v646_v10 = vld [vmem:[%s3099_s30 + $0x28] sm:$0xff]  ;;  %2154 = vlog2.f32 %v994_v49  ;;  %s3103_s11 = sld [smem:[#allocation37_spill]]  ;;  %s633_s27 = scalar_lea.vmem [#allocation16], %s2793_s15 }
  0x9f   : > { %682 = vmatpush.msra.mxu1 %v643_v1  ;;  %v645_v12 = vld [vmem:[%s3099_s30 + $0x20] sm:$0xff]  ;;  %v652_v41 = vld [vmem:[%s3099_s30 + $0x58] sm:$0xff]  ;;  %v651_v42 = vld [vmem:[%s3099_s30 + $0x50] sm:$0xff]  ;;  %2156 = vlog2.f32 %v992_v51  ;;  %s1790_s1 = sshll.u32 %s633_s27, 4  ;;  %s1778_s16 = scalar_lea.sflag [#allocation4], %s2790_s12  ;;  %s1791_s1 = int_to_ptr.vmem [resolvable:$true] %s1790_s1 }
  0xa0   : > { %727 = vmatpush.msra.mxu2 %v652_v41  ;;  %v650_v44 = vld [vmem:[%s3099_s30 + $0x48] sm:$0xff]  ;;  %v649_v46 = vld [vmem:[%s3099_s30 + $0x40] sm:$0xff] }
  0xa1   : > { %683 = vmatpush.msra.mxu1 %v642_v3 }
  0xa2   : > { %v2151_v33 = vpop.eup %2150  ;;  %728 = vmatpush.msra.mxu2 %v651_v42 }
  0xa3   : > { %684 = vmatpush.msra.mxu1 %v641_v5  ;;  %v996_v34 = vmul.f32 0.6931472, %v2151_v33  ;;  %v2153_v52 = vpop.eup %2152 }
  0xa4   : > { %2005 = vmatmul.msk.f32.vlgmr.msra.gmra.mxu1 %vm665_vm0, %v2839_v6  ;;  %729 = vmatpush.msra.mxu2 %v650_v44  ;;  %v2155_v53 = vpop.eup %2154  ;;  %v1000_v54 = vmul.f32 0.6931472, %v2153_v52  ;;  %s1788_s21 = scalar_lea.hbm %s3103_s11, %s2024_s17  ;;  %s2442_s15 = scalar_lea.hbm %s3103_s11, 16 }
  0xa5   : > { %704 = vmatpush.msrb.mxu1 %v648_v7  ;;  %v1002_v56 = vmul.f32 0.6931472, %v2155_v53  ;;  %v2157_v57 = vpop.eup %2156  ;;  %s1792_s9 = sshll.u32 %s1788_s21, 4  ;;  %s1793_s9 = int_to_ptr.hbm [resolvable:$true] %s1792_s9 }
  0xa6   : > { %730 = vmatpush.msra.mxu2 %v649_v46  ;;  %v998_v1 = vmul.f32 0.6931472, %v2157_v57  ;;  %s2436_s29 = sshra.s32 %s1793_s9, 4  ;;  %s2437_s29 = int_to_ptr.hbm [resolvable:$true] %s2436_s29 }
  0xa7   : > { %705 = vmatpush.msrb.mxu1 %v647_v8  ;;  %2007 = vmatmul.msk.f32.vlgmr.msra.gmra.mxu2 %vm665_vm0, %v636_v48  ;;  %s2438_s14 = scalar_lea.hbm %s2437_s29, 8  ;;  %p2443_p1 = scmp.lt.s32.totalorder %s2437_s29, %s3103_s11 }
  0xa8   : > { %p2439_p4 = scmp.ne.s32.totalorder %s2437_s29, %s2438_s14  ;;  %p2444_p11 = scmp.lt.s32.totalorder %s2442_s15, %s2438_s14 }
  0xa9   : > { %706 = vmatpush.msrb.mxu1 %v646_v10 }
  0xaa   : > { %p2440_p3 = pnand %p2439_p4, %p2660_p7  ;;  %p2445_p2 = por %p2444_p11, %p2443_p1 }
  0xab   : > { %707 = vmatpush.msrb.mxu1 %v645_v12 }
  0xac   : > { %2006 = vmatmul.msk.f32.vlgmr.msrb.gmra.mxu1 %vm665_vm0, %v639_v11  ;;  %p2441_p5 = pneg %p2440_p3 }
  0xae   : > { %p2446_p10 = pnand %p2445_p2, %p2441_p5 }
 0x121   : > { %v686_v14 = vpop.f32.mrf.mxu1 }
 0x122   : > { %v687_v15 = vadd.f32 %v2146_v13, %v686_v14 }
 0x124   : > { %738 = vrot.lane.b32.xlu2 %v687_v15, %s2513_s26  ;;  %736 = vrot.lane.b32.xlu1 %v687_v15, %s2514_s5 }
 0x129   : > { %v709_v17 = vpop.f32.mrf.mxu1 }
 0x12a   : > { %v710_v18 = vadd.f32 %v2147_v16, %v709_v17 }
 0x12c   : > { %743 = vrot.lane.b32.xlu0 %v710_v18, %s2514_s5  ;;  %740 = vrot.lane.b32.xlu2 %v687_v15, %s2515_s23 }
 0x12d   : > { %749 = vrot.lane.b32.xlu1 %v710_v18, %s2515_s23 }
 0x134   : > { %746 = vrot.lane.b32.xlu0 %v710_v18, %s2513_s26 }
 0x156   : > { %762 = vxpose.xlu0.b32.start.end [1/1] (short) (narrow) %v710_v18, 8 }
 0x17e   : > { %v739_v25 = vpop.permute.xlu2 %738 }
 0x186   : > { %v741_v26 = vpop.permute.xlu2 %740 }
 0x196   : > { %v737_v19 = vpop.permute.xlu1 %736 }
 0x19e   : > { %v744_v20 = vpop.permute.xlu0 %743 }
 0x19f   : > { %794 = vxpose.xlu1.b32.start.end [1/1] (short) (narrow) %v744_v20, 8  ;;  %v750_v21 = vpop.permute.xlu1 %749 }
 0x1a6   : > { %v747_v22 = vpop.permute.xlu0 %746 }
 0x1a7   : > { %v2139_v23 = vpack.i.bf16 %v750_v21, %v747_v22 }
 0x1a9   : > { %2140 = vxpose.xlu2.b32.start.end [1/1] (short) (narrow) %v2139_v23, 8 }
 0x1fa   : > { %v778_v24 = vpop.trf.xlu0 }
 0x1fb   : > { %908 = vmatpush.msra.mxu3 %v778_v24 }
 0x1fc   : > { %2008 = vmatmul.msk.f32.vlgmr.msra.gmra.mxu3 %vm890_vm1, %v687_v15 }
 0x242   : > { %v2141_v27 = vpop.trf.xlu2 }
 0x243   : > { %v2145_v28 = vunpack.i.h.bf16 %v2141_v27  ;;  %v810_v29 = vpop.trf.xlu1  ;;  %v2142_v30 = vunpack.i.l.bf16 %v2141_v27 }
 0x244   : > { %930 = vmatpush.msrb.mxu3 %v810_v29 }
 0x245   : > { %2009 = vmatmul.msk.f32.vlgmr.msrb.gmra.mxu3 %vm890_vm1, %v737_v19  ;;  %952 = vmatpush.msra.mxu0 %v2142_v30 }
 0x246   : > { %974 = vmatpush.msra.mxu1 %v2145_v28  ;;  %2010 = vmatmul.msk.f32.vlgmr.msra.gmra.mxu0 %vm890_vm1, %v739_v25 }
 0x247   : > { %2011 = vmatmul.msk.f32.vlgmr.msra.gmra.mxu1 %vm890_vm1, %v741_v26 }
 0x27f   : > { %v910_v35 = vpop.f32.mrf.mxu3 }
 0x280   : > { %v979_v36 = vmul.f32 0.35355338, %v910_v35  ;;  %v732_v35 = vpop.f32.mrf.mxu2 }
 0x282   : > { %v1003_v38 = vadd.f32 %v996_v34, %v979_v36  ;;  %v2148_v34 = vld [vmem:[#allocation11 + $0x2] ss:$0 sm:$0xff] }
 0x283   : > { %v733_v36 = vadd.f32 %v2148_v34, %v732_v35  ;;  %v2516_v35 = vmov 1983009808  }
 0x284   : > { %v1007_v39 = vadd.f32 %v1003_v38, %v987_v37 }
 0x286   : > { %v1011_v40 = vsel %vm890_vm1, %v1007_v39, -inf }
 0x287   : > { %1012 = vmax.xlane.f32.xlu0 %v1011_v40 }
 0x2c3   : > { %v954_v55 = vpop.f32.mrf.mxu0 }
 0x2c4   : > { %v981_v58 = vmul.f32 0.35355338, %v954_v55  ;;  %v976_v59 = vpop.f32.mrf.mxu1 }
 0x2c5   : > { %v982_v60 = vmul.f32 0.35355338, %v976_v59 }
 0x2c6   : > { %v1005_v62 = vadd.f32 %v1000_v54, %v981_v58 }
 0x2c7   : > { %v1006_v0 = vadd.f32 %v1002_v56, %v982_v60 }
 0x2c8   : > { %v932_v3 = vpop.f32.mrf.mxu3  ;;  %v1009_v4 = vadd.f32 %v1005_v62, %v989_v61 }
 0x2c9   : > { %v980_v5 = vmul.f32 0.35355338, %v932_v3  ;;  %v1010_v7 = vadd.f32 %v1006_v0, %v990_v63 }
 0x2ca   : > { %v1017_v8 = vsel %vm890_vm1, %v1009_v4, -inf }
 0x2cb   : > { %v1004_v10 = vadd.f32 %v998_v1, %v980_v5  ;;  %1018 = vmax.xlane.f32.xlu1 %v1017_v8  ;;  %v1020_v11 = vsel %vm890_vm1, %v1010_v7, -inf }
 0x2cc   : > { %1021 = vmax.xlane.f32.xlu0 %v1020_v11 }
 0x2cd   : > { %v1008_v12 = vadd.f32 %v1004_v10, %v988_v9 }
 0x2cf   : > { %v1014_v13 = vsel %vm890_vm1, %v1008_v12, -inf }
 0x2d0   : > { %1015 = vmax.xlane.f32.xlu2 %v1014_v13 }
 0x2fa   : > { %v1013_v14 = vpop.xlane.xlu0 %1012 }
 0x2fb   : > { %v1023_v15 = vsub.f32 %v1007_v39, %v1013_v14 }
 0x2fd   : > { %v1027_v16 = vmul.f32 1.442695, %v1023_v15 }
 0x2ff   : > { %2158 = vpow2.f32 %v1027_v16 }
 0x305   : > { %v2159_v17 = vpop.eup %2158 }
 0x306   : > { %v1035_v18 = vsel %vm890_vm1, %v2159_v17, 0.0 }
 0x307   : > { %1036 = vadd.xlane.f32.xlu1 %v1035_v18 }
 0x33e   : > { %v1019_v19 = vpop.xlane.xlu1 %1018 }
 0x33f   : > { %v1025_v20 = vsub.f32 %v1009_v4, %v1019_v19  ;;  %v1022_v21 = vpop.xlane.xlu0 %1021 }
 0x340   : > { %v1026_v22 = vsub.f32 %v1010_v7, %v1022_v21 }
 0x341   : > { %v1031_v23 = vmul.f32 1.442695, %v1025_v20 }
 0x342   : > { %v1033_v24 = vmul.f32 1.442695, %v1026_v22 }
 0x343   : > { %2160 = vpow2.f32 %v1031_v23  ;;  %v1016_v25 = vpop.xlane.xlu2 %1015 }
 0x344   : > { %2162 = vpow2.f32 %v1033_v24  ;;  %v1024_v26 = vsub.f32 %v1008_v12, %v1016_v25 }
 0x346   : > { %v1029_v27 = vmul.f32 1.442695, %v1024_v26 }
 0x348   : > { %2164 = vpow2.f32 %v1029_v27 }
 0x349   : > { %v2894_v28 = vpop.eup %2160 }
 0x34a   : > { %v2896_v29 = vpop.eup %2162  ;;  %v1041_v30 = vsel %vm890_vm1, %v2894_v28, 0.0 }
 0x34b   : > { %1042 = vadd.xlane.f32.xlu0 %v1041_v30  ;;  %v1044_v31 = vsel %vm890_vm1, %v2896_v29, 0.0 }
 0x34c   : > { %1045 = vadd.xlane.f32.xlu1 %v1044_v31 }
 0x34e   : > { %v2902_v32 = vpop.eup %2164 }
 0x34f   : > { %v1038_v33 = vsel %vm890_vm1, %v2902_v32, 0.0 }
 0x350   : > { %1039 = vadd.xlane.f32.xlu2 %v1038_v33 }
 0x35f   : > { %756 = vrot.lane.b32.xlu0 %v733_v36, %s2513_s26  ;;  %s3101_s26 = sld [smem:[#allocation35_spill]] }
 0x365   : > { %759 = vrot.lane.b32.xlu1 %v733_v36, %s2515_s23 }
 0x368   : > { %753 = vrot.lane.b32.xlu2 %v733_v36, %s2514_s5 }
 0x37a   : > { %v1037_v37 = vpop.xlane.xlu1 %1036 }
 0x37b   : > { %2166 = vrcp.f32 %v1037_v37  ;;  %v1058_v41 = vand.u32 2147483648, %v1037_v37  ;;  %v1056_v43 = vand.u32 2147483647, %v1037_v37  ;;  %vm1052_vm3 = vweird.f32 %v1037_v37 }
 0x37d   : > { %v1059_v45 = vor.u32 1.1754944e-38, %v1058_v41  ;;  %vm1057_vm5 = vcmp.eq.f32.partialorder %v1056_v43, 8.507059e+37 }
 0x381   : > { %v2167_v38 = vpop.eup %2166  ;;  %1107 = vxpose.xlu0.b32.start.end [1/1] (short) (narrow) %v733_v36, 8  ;;  %v1473_v36 = vunpack.c.l.s4 %v2516_v35 }
 0x382   : > { %v1048_v39 = vmul.f32 %v2167_v38, %v1037_v37  ;;  %vm1053_vm2 = vweird.f32 %v2167_v38 }
 0x383   : > { %vm1054_vm4 = vmor %vm1052_vm3, %vm1053_vm2 }
 0x384   : > { %v1049_v40 = vsub.f32 1.0, %v1048_v39 }
 0x386   : > { %v1050_v42 = vmul.f32 %v2167_v38, %v1049_v40  ;;  %v1474_v40 = vunpack.c.0.s8 %v1473_v36 }
 0x388   : > { %v1051_v44 = vadd.f32 %v2167_v38, %v1050_v42 }
 0x38a   : > { %v1055_v46 = vsel %vm1054_vm4, %v2167_v38, %v1051_v44  ;;  %vm1468_vm4 = vcmask 1047556  }
 0x38b   : > { %v1060_v47 = vsel %vm1057_vm5, %v1059_v45, %v1055_v46  ;;  %v2517_v45 = vmov 1934713408   ;;  %vm1591_vm5 = vcmask 130048  }
 0x38c   : > { %v1103_v48 = vmul.f32 %v2159_v17, %v1060_v47  ;;  %v1497_v46 = vunpack.c.l.s4 %v2517_v45  ;;  %v1597_v45 = vld [vmem:[#allocation13 + $0x10] sm:$0xff] }
 0x38e   : > { %2012 = vmatpush.xpose.msk.msrb.mxu2 %vm890_vm1, %v1103_v48 }
 0x3be   : > { %v1043_v49 = vpop.xlane.xlu0 %1042 }
 0x3bf   : > { %v1046_v50 = vpop.xlane.xlu1 %1045  ;;  %2168 = vrcp.f32 %v1043_v49  ;;  %v1086_v57 = vand.u32 2147483648, %v1043_v49  ;;  %v1084_v60 = vand.u32 2147483647, %v1043_v49  ;;  %vm1080_vm9 = vweird.f32 %v1043_v49 }
 0x3c0   : > { %2170 = vrcp.f32 %v1046_v50  ;;  %v1098_v59 = vand.u32 2147483647, %v1046_v50  ;;  %v1100_v62 = vand.u32 2147483648, %v1046_v50  ;;  %vm1094_vm8 = vweird.f32 %v1046_v50 }
 0x3c1   : > { %v1087_v4 = vor.u32 1.1754944e-38, %v1086_v57  ;;  %vm1085_vm12 = vcmp.eq.f32.partialorder %v1084_v60, 8.507059e+37 }
 0x3c2   : > { %vm1099_vm10 = vcmp.eq.f32.partialorder %v1098_v59, 8.507059e+37  ;;  %v1101_v9 = vor.u32 1.1754944e-38, %v1100_v62 }
 0x3c3   : > { %v1040_v51 = vpop.xlane.xlu2 %1039 }
 0x3c4   : > { %2172 = vrcp.f32 %v1040_v51  ;;  %v1070_v10 = vand.u32 2147483647, %v1040_v51  ;;  %v1072_v11 = vand.u32 2147483648, %v1040_v51  ;;  %vm1066_vm15 = vweird.f32 %v1040_v51 }
 0x3c5   : > { %v2169_v52 = vpop.eup %2168 }
 0x3c6   : > { %v2171_v53 = vpop.eup %2170  ;;  %v1076_v54 = vmul.f32 %v2169_v52, %v1043_v49  ;;  %vm1081_vm6 = vweird.f32 %v2169_v52  ;;  %v1073_v21 = vor.u32 1.1754944e-38, %v1072_v11  ;;  %vm1071_vm3 = vcmp.eq.f32.partialorder %v1070_v10, 8.507059e+37 }
 0x3c7   : > { %v1090_v55 = vmul.f32 %v2171_v53, %v1046_v50  ;;  %vm1095_vm7 = vweird.f32 %v2171_v53  ;;  %vm1082_vm11 = vmor %vm1080_vm9, %vm1081_vm6  ;;  %v1498_v50 = vunpack.c.0.s8 %v1497_v46  ;;  %v1596_v46 = vld [vmem:[#allocation13 + $0x8] sm:$0xff]  ;;  %vm1593_vm6 = vcmask 195584  }
 0x3c8   : > { %v1077_v56 = vsub.f32 1.0, %v1076_v54  ;;  %vm1096_vm13 = vmor %vm1094_vm8, %vm1095_vm7 }
 0x3c9   : > { %v1091_v58 = vsub.f32 1.0, %v1090_v55 }
 0x3ca   : > { %v2173_v61 = vpop.eup %2172  ;;  %v1078_v63 = vmul.f32 %v2169_v52, %v1077_v56 }
 0x3cb   : > { %v1092_v0 = vmul.f32 %v2171_v53, %v1091_v58  ;;  %v1062_v1 = vmul.f32 %v2173_v61, %v1040_v51  ;;  %v754_v3 = vpop.permute.xlu2 %753  ;;  %vm1067_vm14 = vweird.f32 %v2173_v61 }
 0x3cc   : > { %1139 = vxpose.xlu2.b32.start.end [1/1] (short) (narrow) %v754_v3, 8  ;;  %v1079_v5 = vadd.f32 %v2169_v52, %v1078_v63  ;;  %vm1068_vm2 = vmor %vm1066_vm15, %vm1067_vm14 }
 0x3cd   : > { %v1093_v7 = vadd.f32 %v2171_v53, %v1092_v0  ;;  %v1063_v8 = vsub.f32 1.0, %v1062_v1 }
 0x3ce   : > { %v1083_v12 = vsel %vm1082_vm11, %v2169_v52, %v1079_v5 }
 0x3cf   : > { %v1097_v13 = vsel %vm1096_vm13, %v2171_v53, %v1093_v7  ;;  %v1064_v14 = vmul.f32 %v2173_v61, %v1063_v8  ;;  %v1088_v15 = vsel %vm1085_vm12, %v1087_v4, %v1083_v12  ;;  %vm1725_vm13 = vcmask 523264  }
 0x3d0   : > { %v1102_v16 = vsel %vm1099_vm10, %v1101_v9, %v1097_v13  ;;  %v1105_v17 = vmul.f32 %v2894_v28, %v1088_v15 }
 0x3d1   : > { %v1065_v18 = vadd.f32 %v2173_v61, %v1064_v14  ;;  %v757_v19 = vpop.permute.xlu0 %756  ;;  %v1106_v20 = vmul.f32 %v2896_v29, %v1102_v16 }
 0x3d2   : > { %2016 = vmatpush.xpose.msk.msrb.mxu0 %vm890_vm1, %v1105_v17  ;;  %1171 = vxpose.xlu1.b32.start.end [1/1] (short) (narrow) %v757_v19, 8 }
 0x3d3   : > { %v1069_v22 = vsel %vm1068_vm2, %v2173_v61, %v1065_v18  ;;  %2018 = vmatpush.xpose.msk.msrb.mxu1 %vm890_vm1, %v1106_v20 }
 0x3d4   : > { %v1074_v23 = vsel %vm1071_vm3, %v1073_v21, %v1069_v22 }
 0x3d5   : > { %v1104_v24 = vmul.f32 %v2902_v32, %v1074_v23 }
 0x3d7   : > { %v760_v25 = vpop.permute.xlu1 %759  ;;  %2014 = vmatpush.xpose.msk.msra.mxu3 %vm890_vm1, %v1104_v24 }
 0x3d8   : > { %1203 = vxpose.xlu0.b32.start.end [1/1] (short) (narrow) %v760_v25, 8 }
 0x425   : > { %v1123_v26 = vpop.trf.xlu0 }
 0x426   : > { %2013 = vmatmul.msk.f32.vlgmr.msrb.gmra.mxu2 %vm890_vm1, %v1123_v26 }
 0x465   : > { %v1155_v27 = vpop.trf.xlu2 }
 0x466   : > { %2015 = vmatmul.msk.f32.vlgmr.msra.gmra.mxu3 %vm890_vm1, %v1155_v27 }
 0x476   : > { %v1187_v28 = vpop.trf.xlu1 }
 0x477   : > { %2017 = vmatmul.msk.f32.vlgmr.msrb.gmra.mxu0 %vm890_vm1, %v1187_v28 }
 0x47c   : > { %v1219_v29 = vpop.trf.xlu0 }
 0x47d   : > { %2019 = vmatmul.msk.f32.vlgmr.msrb.gmra.mxu1 %vm890_vm1, %v1219_v29 }
 0x4a9   : > { %v1258_v30 = vpop.f32.mrf.mxu2 }
 0x4aa   : > { %1339 = vxpose.xlu0.b32.start.end [1/1] (short) (narrow) %v1258_v30, 8 }
 0x4e9   : > { %v1284_v31 = vpop.f32.mrf.mxu3 }
 0x4ea   : > { %1371 = vxpose.xlu0.b32.start.end [1/1] (short) (narrow) %v1284_v31, 8 }
 0x4f4   : > { %v1310_v32 = vpop.f32.mrf.mxu0 }
 0x4f5   : > { %1403 = vxpose.xlu2.b32.start.end [1/1] (short) (narrow) %v1310_v32, 8 }
 0x4fa   : > { %v1336_v33 = vpop.f32.mrf.mxu1 }
 0x4fd   : > { %1435 = vxpose.xlu2.b32.start.end [1/1] (short) (narrow) %v1336_v33, 8 }
 0x54e   : > { %v1355_v34 = vpop.trf.xlu0 }
 0x54f   : > { %v1470_v37 = vrot.slane %v1355_v34, 4 }
 0x58e   : > { %v1419_v38 = vpop.trf.xlu2  ;;  %v1387_v41 = vpop.trf.xlu0 }
 0x58f   : > { %v1467_v39 = vrot.slane %v1419_v38, 4  ;;  %v1471_v42 = vsel %vm1468_vm4, %v1419_v38, %v1470_v37  ;;  %v1482_v44 = vrot.slane %v1387_v41, 4 }
 0x590   : > { %v1479_v47 = vperm.slane %v1471_v42, %v1474_v40 }
 0x591   : > { %v1469_v43 = vsel %vm1468_vm4, %v1467_v39, %v1355_v34 }
 0x592   : > { %v1475_v48 = vperm.slane %v1469_v43, %v1474_v40  ;;  %v1506_v53 = vrot.slane %v1479_v47, 4 }
 0x594   : > { %v1494_v56 = vrot.slane %v1475_v48, 4 }
 0x596   : > { %v1451_v49 = vpop.trf.xlu2 }
 0x597   : > { %v1480_v51 = vrot.slane %v1451_v49, 4  ;;  %v1483_v52 = vsel %vm1468_vm4, %v1451_v49, %v1482_v44  ;;  %v1598_v44 = vld [vmem:[#allocation13 + $0x18] sm:$0xff] }
 0x598   : > { %v1491_v54 = vperm.slane %v1483_v52, %v1474_v40  ;;  %1615 = vmatpush.msra.mxu2 %v1598_v44 }
 0x599   : > { %v1481_v55 = vsel %vm1468_vm4, %v1480_v51, %v1387_v41 }
 0x59a   : > { %v1487_v57 = vperm.slane %v1481_v55, %v1474_v40  ;;  %v1504_v58 = vrot.slane %v1491_v54, 4  ;;  %v1507_v59 = vsel %vm1468_vm4, %v1491_v54, %v1506_v53  ;;  %1616 = vmatpush.msra.mxu2 %v1597_v45  ;;  %v2949_v54 = vld [vmem:[%s3100_s25] sm:$0xff] }
 0x59b   : > { %v1515_v60 = vperm.slane %v1507_v59, %v1498_v50  ;;  %v1599_v55 = vperm.slane %v2949_v54, 0 }
 0x59c   : > { %v1492_v61 = vrot.slane %v1487_v57, 4  ;;  %v1495_v62 = vsel %vm1468_vm4, %v1487_v57, %v1494_v56  ;;  %v1505_v63 = vsel %vm1468_vm4, %v1504_v58, %v1479_v47  ;;  %1617 = vmatpush.msra.mxu2 %v1596_v46  ;;  %v1595_v47 = vld [vmem:[#allocation13] sm:$0xff] }
 0x59d   : > { %v1503_v0 = vperm.slane %v1495_v62, %v1498_v50  ;;  %v1511_v1 = vperm.slane %v1505_v63, %v1498_v50  ;;  %v1522_v3 = vrot.slane %v1515_v60, 4  ;;  %v2521_v60 = vmov 32.0  }
 0x59e   : > { %v1493_v4 = vsel %vm1468_vm4, %v1492_v61, %v1475_v48  ;;  %1618 = vmatpush.msra.mxu2 %v1595_v47  ;;  %2174 = vrcp.f32 %v2521_v60 }
 0x59f   : > { %v1499_v5 = vperm.slane %v1493_v4, %v1498_v50  ;;  %v1518_v7 = vrot.slane %v1503_v0, 4  ;;  %v1520_v8 = vrot.slane %v1511_v1, 4  ;;  %v1523_v9 = vsel %vm1468_vm4, 0.0, %v1522_v3 }
 0x5a0   : > { %v1535_v10 = vsel %vm1468_vm4, %v1522_v3, %v1511_v1  ;;  %v1540_v11 = vrot.slane %v1523_v9, 4 }
 0x5a1   : > { %v1516_v12 = vrot.slane %v1499_v5, 4  ;;  %v1519_v13 = vsel %vm1468_vm4, 0.0, %v1518_v7  ;;  %v1521_v14 = vsel %vm1468_vm4, 0.0, %v1520_v8  ;;  %v1539_v15 = vperm.slane %v1535_v10, %v1474_v40 }
 0x5a2   : > { %v1529_v16 = vrot.slane %v1519_v13, 4  ;;  %v1524_v17 = vsel %vm1468_vm4, %v1518_v7, %v1499_v5  ;;  %v1541_v18 = vsel %vm1468_vm4, %v1540_v11, %v1521_v14 }
 0x5a3   : > { %v1517_v19 = vsel %vm1468_vm4, 0.0, %v1516_v12  ;;  %v1528_v20 = vperm.slane %v1524_v17, %v1474_v40  ;;  %v1545_v21 = vperm.slane %v1541_v18, %v1474_v40  ;;  %v1560_v22 = vrot.slane %v1539_v15, 4 }
 0x5a4   : > { %v1530_v23 = vsel %vm1468_vm4, %v1529_v16, %v1517_v19  ;;  %v2175_v61 = vpop.eup %2174  ;;  %v1653_v18 = vperm.slane %v2949_v54, 2 }
 0x5a5   : > { %v1534_v24 = vperm.slane %v1530_v23, %v1474_v40  ;;  %v1548_v25 = vrot.slane %v1528_v20, 4  ;;  %v1561_v26 = vsel %vm1468_vm4, %v1545_v21, %v1560_v22  ;;  %v1558_v27 = vrot.slane %v1545_v21, 4 }
 0x5a6   : > { %v1569_v28 = vperm.slane %v1561_v26, %v1498_v50  ;;  %v1628_v62 = vmul.f32 32.0, %v2175_v61  ;;  %v1655_v21 = vperm.slane %v2949_v54, 3 }
 0x5a7   : > { %v1549_v29 = vsel %vm1468_vm4, %v1534_v24, %v1548_v25  ;;  %v1546_v30 = vrot.slane %v1534_v24, 4  ;;  %v1559_v31 = vsel %vm1468_vm4, %v1558_v27, %v1539_v15 }
 0x5a8   : > { %v1557_v32 = vperm.slane %v1549_v29, %v1498_v50  ;;  %v1574_v33 = vrot.slane %v1569_v28, 4  ;;  %v1565_v34 = vperm.slane %v1559_v31, %v1498_v50  ;;  %v1629_v63 = vsub.f32 1.0, %v1628_v62  ;;  %v1687_v31 = vld [vmem:[#allocation14 + $0x18] sm:$0xff] }
 0x5a9   : > { %v1547_v35 = vsel %vm1468_vm4, %v1546_v30, %v1528_v20  ;;  %1707 = vmatpush.msrb.mxu3 %v1687_v31  ;;  %v1724_v62 = vperm.slane %v2949_v54, 1 }
 0x5aa   : > { %v1575_v36 = vsel %vm1468_vm4, %v1574_v33, %v1557_v32  ;;  %v1576_v37 = vrot.slane %v1557_v32, 4  ;;  %v1553_v38 = vperm.slane %v1547_v35, %v1498_v50  ;;  %v1570_v39 = vrot.slane %v1565_v34, 4  ;;  %v1686_v32 = vld [vmem:[#allocation14 + $0x10] sm:$0xff]  ;;  %v1685_v33 = vld [vmem:[#allocation14 + $0x8] sm:$0xff] }
 0x5ab   : > { %1583 = vrot.lane.b32.xlu0 %v1575_v36, %s2518_s28  ;;  %v1630_v0 = vmul.f32 %v2175_v61, %v1629_v63  ;;  %1708 = vmatpush.msrb.mxu3 %v1686_v32  ;;  %v1722_v35 = vld [vmem:[%s3101_s26 + $0x30] sm:$0xff]  ;;  %v1721_v36 = vld [vmem:[%s3101_s26 + $0x28] sm:$0xff] }
 0x5ac   : > { %v1577_v40 = vsel %vm1468_vm4, %v1569_v28, %v1576_v37  ;;  %v1572_v41 = vrot.slane %v1553_v38, 4  ;;  %v1571_v42 = vsel %vm1468_vm4, %v1570_v39, %v1553_v38  ;;  %v1720_v39 = vld [vmem:[%s3101_s26 + $0x20] sm:$0xff] }
 0x5ad   : > { %1587 = vrot.lane.b32.xlu1 %v1577_v40, %s2519_s20  ;;  %v1631_v1 = vadd.f32 %v2175_v61, %v1630_v0  ;;  %1709 = vmatpush.msrb.mxu3 %v1685_v33 }
 0x5ae   : > { %v1573_v43 = vsel %vm1468_vm4, %v1565_v34, %v1572_v41  ;;  %v1684_v34 = vld [vmem:[#allocation14] sm:$0xff]  ;;  %v1719_v41 = vld [vmem:[%s3101_s26 + $0x18] sm:$0xff] }
 0x5af   : > { %1579 = vrot.lane.b32.xlu2 %v1573_v43, %s2520_s6  ;;  %1710 = vmatpush.msrb.mxu3 %v1684_v34 }
 0x609   : > { %v1580_v48 = vpop.permute.xlu2 %1579 }
 0x60a   : > { %v1590_v49 = vsel %vm890_vm1, %v1571_v42, %v1580_v48  ;;  %vm1632_vm1 = vweird.f32 %v2175_v61  ;;  %v1680_v48 = vperm.slane %v2949_v54, 4 }
 0x60b   : > { %v2954_v3 = vsel %vm1632_vm1, %v2175_v61, %v1631_v1 }
 0x61d   : > { %v1584_v50 = vpop.permute.xlu0 %1583 }
 0x61e   : > { %v1592_v51 = vsel %vm1591_vm5, %v1590_v49, %v1584_v50 }
 0x61f   : > { %v1588_v52 = vpop.permute.xlu1 %1587 }
 0x620   : > { %v1594_v53 = vsel %vm1593_vm6, %v1592_v51, %v1588_v52  ;;  %v1682_v51 = vperm.slane %v2949_v54, 5 }
 0x621   : > { %2020 = vmatmul.msk.f32.vlgmr.msra.gmra.mxu2 %vm665_vm0, %v1594_v53 }
 0x6a4   : > { %v1620_v56 = vpop.f32.mrf.mxu2 }
 0x6a5   : > { %v1621_v57 = vadd.f32 %v1620_v56, %v1599_v55  ;;  %v1718_v55 = vld [vmem:[%s3101_s26 + $0x10] sm:$0xff]  ;;  %v1717_v56 = vld [vmem:[%s3101_s26 + $0x8] sm:$0xff] }
 0x6a7   : > { %v1623_v58 = vadd.f32 %v1621_v57, %v2839_v6  ;;  %v1716_v57 = vld [vmem:[%s3101_s26] sm:$0xff] }
 0x6a9   : > { %v1624_v59 = vsel %vm665_vm0, %v1623_v58, 0.0 }
 0x6aa   : > { %1625 = vadd.xlane.f32.xlu1 %v1624_v59 }
 0x71d   : > { %v1626_v4 = vpop.xlane.xlu1 %1625 }
 0x71e   : > { %v1634_v5 = vmul.f32 %v2954_v3, %v1626_v4 }
 0x720   : > { %v1635_v7 = vsub.f32 %v1623_v58, %v1634_v5  ;;  %v2149_v58 = vld [vmem:[%s3102_s19] ss:$0 sm:$0xff] }
 0x722   : > { %v1636_v8 = vmul.f32 %v1635_v7, %v1635_v7 }
 0x724   : > { %v1637_v6 = vsel %vm665_vm0, %v1636_v8, 0.0 }
 0x725   : > { %1638 = vadd.xlane.f32.xlu2 %v1637_v6 }
 0x798   : > { %v1639_v9 = vpop.xlane.xlu2 %1638 }
 0x799   : > { %v1640_v10 = vmul.f32 %v1639_v9, %v2954_v3 }
 0x79b   : > { %v1641_v11 = vadd.f32 1e-05, %v1640_v10 }
 0x79d   : > { %2176 = vrsqrt.f32 %v1641_v11  ;;  %vm1648_vm8 = vweird.f32 %v1641_v11 }
 0x7a3   : > { %v2177_v12 = vpop.eup %2176 }
 0x7a4   : > { %v1643_v13 = vmul.f32 %v2177_v12, %v1641_v11  ;;  %vm1649_vm7 = vweird.f32 %v2177_v12 }
 0x7a5   : > { %vm1650_vm9 = vmor %vm1648_vm8, %vm1649_vm7 }
 0x7a6   : > { %v1644_v14 = vmul.f32 %v2177_v12, %v1643_v13 }
 0x7a8   : > { %v1645_v15 = vmul.f32 0.5, %v1644_v14 }
 0x7aa   : > { %v1646_v16 = vsub.f32 1.5, %v1645_v15 }
 0x7ac   : > { %v1647_v17 = vmul.f32 %v2177_v12, %v1646_v16 }
 0x7ae   : > { %v1651_v19 = vsel %vm1650_vm9, %v2177_v12, %v1647_v17 }
 0x7af   : > { %v1652_v20 = vmul.f32 %v1651_v19, %v1635_v7  ;;  %v1772_v19 = vperm.slane %v2949_v54, 6 }
 0x7b1   : > { %v1654_v22 = vmul.f32 %v1653_v18, %v1652_v20 }
 0x7b3   : > { %v1656_v23 = vadd.f32 %v1655_v21, %v1654_v22  ;;  %v1774_v21 = vperm.slane %v2949_v54, 7 }
 0x7b5   : > { %v1657_v24 = vadd.f32 %v1656_v23, %v2830_v2  ;;  %v1723_v2 = vld [vmem:[%s3101_s26 + $0x38] sm:$0xff] }
 0x7b6   : > { %1737 = vmatpush.msra.mxu0 %v1723_v2 }
 0x7b7   : > { %v1658_v25 = vsel %vm665_vm0, %v1657_v24, 0.0 }
 0x7b8   : > { %1659 = vadd.xlane.f32.xlu0 %v1658_v25  ;;  %1738 = vmatpush.msra.mxu0 %v1722_v35 }
 0x7ba   : > { %1739 = vmatpush.msra.mxu0 %v1721_v36 }
 0x7bc   : > { %1740 = vmatpush.msra.mxu0 %v1720_v39 }
 0x7be   : > { %1741 = vmatpush.msra.mxu0 %v1719_v41 }
 0x7c0   : > { %1742 = vmatpush.msra.mxu0 %v1718_v55 }
 0x7c2   : > { %1743 = vmatpush.msra.mxu0 %v1717_v56 }
 0x7c4   : > { %1744 = vmatpush.msra.mxu0 %v1716_v57 }
 0x82b   : > { %v1660_v26 = vpop.xlane.xlu0 %1659 }
 0x82c   : > { %v1661_v27 = vmul.f32 %v1660_v26, %v2954_v3 }
 0x82e   : > { %v1662_v28 = vsub.f32 %v1657_v24, %v1661_v27 }
 0x830   : > { %v1663_v29 = vmul.f32 %v1662_v28, %v1662_v28 }
 0x832   : > { %v1664_v30 = vsel %vm665_vm0, %v1663_v29, 0.0 }
 0x833   : > { %1665 = vadd.xlane.f32.xlu1 %v1664_v30 }
 0x8a6   : > { %v1666_v37 = vpop.xlane.xlu1 %1665 }
 0x8a7   : > { %v1667_v38 = vmul.f32 %v1666_v37, %v2954_v3 }
 0x8a9   : > { %v1668_v40 = vadd.f32 1e-05, %v1667_v38 }
 0x8ab   : > { %2178 = vrsqrt.f32 %v1668_v40  ;;  %vm1675_vm11 = vweird.f32 %v1668_v40 }
 0x8b1   : > { %v2179_v42 = vpop.eup %2178 }
 0x8b2   : > { %v1670_v43 = vmul.f32 %v2179_v42, %v1668_v40  ;;  %vm1676_vm10 = vweird.f32 %v2179_v42 }
 0x8b3   : > { %vm1677_vm12 = vmor %vm1675_vm11, %vm1676_vm10 }
 0x8b4   : > { %v1671_v44 = vmul.f32 %v2179_v42, %v1670_v43 }
 0x8b6   : > { %v1672_v45 = vmul.f32 0.5, %v1671_v44 }
 0x8b8   : > { %v1673_v46 = vsub.f32 1.5, %v1672_v45 }
 0x8ba   : > { %v1674_v47 = vmul.f32 %v2179_v42, %v1673_v46 }
 0x8bc   : > { %v1678_v49 = vsel %vm1677_vm12, %v2179_v42, %v1674_v47 }
 0x8bd   : > { %v1679_v50 = vmul.f32 %v1678_v49, %v1662_v28 }
 0x8bf   : > { %v1681_v52 = vmul.f32 %v1680_v48, %v1679_v50 }
 0x8c1   : > { %v1683_v53 = vadd.f32 %v1682_v51, %v1681_v52 }
 0x8c3   : > { %2021 = vmatmul.msk.f32.vlgmr.msrb.gmra.mxu3 %vm665_vm0, %v1683_v53 }
 0x946   : > { %v1712_v59 = vpop.f32.mrf.mxu3 }
 0x947   : > { %v1713_v60 = vadd.f32 %v2149_v58, %v1712_v59 }
 0x949   : > { %v1715_v61 = vmax.f32 %v1713_v60, 0.0 }
 0x94b   : > { %2022 = vmatmul.msk.f32.vlgmr.msra.gmra.mxu0 %vm1725_vm13, %v1715_v61 }
 0x9c8   : > { %v1746_v63 = vpop.f32.mrf.mxu0 }
 0x9c9   : > { %v1747_v0 = vadd.f32 %v1746_v63, %v1724_v62 }
 0x9cb   : > { %v1749_v1 = vadd.f32 %v1747_v0, %v1683_v53 }
 0x9cd   : > { %v1750_v4 = vsel %vm665_vm0, %v1749_v1, 0.0 }
 0x9ce   : > { %1751 = vadd.xlane.f32.xlu1 %v1750_v4 }
 0xa41   : > { %v1752_v5 = vpop.xlane.xlu1 %1751 }
 0xa42   : > { %v1753_v7 = vmul.f32 %v1752_v5, %v2954_v3 }
 0xa44   : > { %v1754_v8 = vsub.f32 %v1749_v1, %v1753_v7 }
 0xa46   : > { %v1755_v6 = vmul.f32 %v1754_v8, %v1754_v8 }
 0xa48   : > { %v1756_v9 = vsel %vm665_vm0, %v1755_v6, 0.0 }
 0xa49   : > { %1757 = vadd.xlane.f32.xlu2 %v1756_v9 }
 0xabc   : > { %v1758_v10 = vpop.xlane.xlu2 %1757 }
 0xabd   : > { %v1759_v11 = vmul.f32 %v1758_v10, %v2954_v3 }
 0xabf   : > { %v1760_v12 = vadd.f32 1e-05, %v1759_v11 }
 0xac1   : > { %2180 = vrsqrt.f32 %v1760_v12  ;;  %vm1767_vm15 = vweird.f32 %v1760_v12 }
 0xac7   : > { %v2181_v13 = vpop.eup %2180 }
 0xac8   : > { %v1762_v14 = vmul.f32 %v2181_v13, %v1760_v12  ;;  %vm1768_vm14 = vweird.f32 %v2181_v13 }
 0xac9   : > { %vm1769_vm2 = vmor %vm1767_vm15, %vm1768_vm14 }
 0xaca   : > { %v1763_v15 = vmul.f32 %v2181_v13, %v1762_v14 }
 0xacc   : > { %v1764_v16 = vmul.f32 0.5, %v1763_v15 }
 0xace   : > { %v1765_v17 = vsub.f32 1.5, %v1764_v16 }
 0xad0   : > { %v1766_v18 = vmul.f32 %v2181_v13, %v1765_v17 }
 0xad2   : > { %v1770_v3 = vsel %vm1769_vm2, %v2181_v13, %v1766_v18 }
 0xad3   : > { %v1771_v20 = vmul.f32 %v1770_v3, %v1754_v8 }
 0xad5   : > { %v1773_v22 = vmul.f32 %v1772_v19, %v1771_v20 }
 0xad7   : > { %v1775_v23 = vadd.f32 %v1774_v21, %v1773_v22 }
 0xad9   : > { %1776 = vst.msk [vmem:[%s633_s27] sm:$0xff] %vm665_vm0, %v1775_v23 }
 0xada   : > { %2449 = shalt.err (!%p2446_p10)
}
 0xadb   : > { %2050 = dma.vmem_to_hbm [thread:$0]  (%p2660_p7), %s1791_s1, 128, %s1793_s9, %s1778_s16  }
 0xadc PF: > { %s3105_s12 = sld [smem:[#allocation23_spill]]  ;;  %p3107_p13 = scmp.ge.s32.totalorder %s2504_s24, 2 }
 0xade   : > { %p2079_p8 = pnand %p3107_p13, %p2622_p6 }
 0xae0   : > { %p2080_p9 = pneg %p2079_p8 }
 0xae2   : > { %s1804_s25 = sand.u32 1, %s3105_s12  }
 0xae3   : > { %s1805_s19 = scalar_lea.sflag [#allocation4], %s1804_s25 }
 0xae4   : > { %2487 = dma.done.wait (%p2080_p9), %s1805_s19, 128  }
 0xae5   : > { %2489 = vsyncadd (%p2080_p9), %s1805_s19, 4294967168  ;;  %s3108_s24 = sld [smem:[#allocation28_spill]]  ;;  %s3111_s21 = smov %s2496_s22 }
 0xae6   : > { %s3109_s17 = sld [smem:[#allocation24_spill]] }
 0xae7   : > { %s3110_s23 = sld [smem:[#allocation29_spill]] }
 0xaeb   : > { %p33_p12 = scmp.ge.s32.totalorder %s3108_s24, 4  }
 0xaec   : > { %s3112_s22 = smov %s3109_s17 }
 0xaed   :  { %35 = sbr.rel (!%p33_p12) target bundleno = 19 (0x13), region = 173 }
 0xaf2   :  { %1811 = vsyncpa [#allocation3], 1 }
 0xaf3   :  { %1813 = vsyncpa [#allocation3 + $0x1], 1 }
 0xaf4   :  { %1814 = vsyncpa [#allocation6], 1 }
 0xaf5   :  { %1816 = vsyncpa [#allocation6 + $0x1], 1 }
 0xaf6   :  { %1817 = vsyncpa [#allocation9], 1 }
 0xaf7   :  { %1819 = vsyncpa [#allocation9 + $0x1], 1 }
 0xaf8   :  { %1820 = vsyncpa [#allocation12], 1 }
 0xaf9   :  { %1821 = vsyncpa [#allocation15], 1 }
 0xafa   :  { %1822 = vsyncpa [#allocation4], 1 }
 0xafb   :  { %1824 = vsyncpa [#allocation4 + $0x1], 1 }

</bundles_post_ra>
